<compile_context>
chip_gen: v5e
topology: v5e:2x2
jax: 0.10.0
libtpu: 0.0.40
codegen_flags: <defaults>
</compile_context>

<pallas_src>
import functools

import jax
import jax.numpy as jnp
import numpy as np
from jax.experimental import pallas as pl
from jax.experimental.pallas import tpu as pltpu

EPS = 1e-10

_TARGET_BLOCK_BYTES = 1 << 20   # ~1 MiB per pipelined block
_LANE = 128


def _l2norm_kernel(x_ref, w_ref, o_ref, *, eps):
    # x_ref: (bn, C, T)   w_ref: (C, 1)   o_ref: (bn, C, T)
    x = x_ref[...].astype(jnp.float32)                      # bf16 in -> f32 math
    ss = jnp.sum(x * x, axis=1, keepdims=True)              # (bn, 1, T) channel SSQ
    inv = pl.reciprocal(jnp.sqrt(ss) + eps, approx=False)   # (bn, 1, T), exact
    w = w_ref[...].astype(jnp.float32)[None]                # (1, C, 1)
    o_ref[...] = (x * (w * inv)).astype(o_ref.dtype)


def _choose_tiling(n, c, hw, in_itemsize):
    """Pick (bn, t): images per block and lane-aligned spatial tile.

    Budget: ~1 MiB per block (double-buffered in + out stays well inside the
    scoped-VMEM defaults on v5e/v6e/v7x).  Keep >= 2 grid programs whenever
    possible so v7x's two TensorCores both get work.
    """
    col_bytes = c * max(in_itemsize, 4)            # f32 working copy dominates
    hw_tiles = -(-hw // _LANE)                     # 128-lane groups in H*W
    max_tiles = max(1, _TARGET_BLOCK_BYTES // (_LANE * col_bytes))
    t = _LANE * min(hw_tiles, max_tiles)
    num_spatial = -(-hw // t)

    # Batch images per block while a single-image block is under budget.
    bn = max(1, min(n, _TARGET_BLOCK_BYTES // (t * col_bytes)))
    num_batch = -(-n // bn)

    # Never collapse to a single grid program if avoidable (v7x megacore).
    if num_batch * num_spatial < 2:
        if n >= 2:
            bn = -(-n // 2)                        # exactly 2 batch blocks
        elif hw_tiles >= 2:
            t = _LANE * max(1, hw_tiles // 2)      # split the spatial axis
    return bn, t


def l2norm(x_nchw, weight, eps=EPS):
    n, c, h, w = x_nchw.shape
    hw = h * w
    in_itemsize = x_nchw.dtype.itemsize
    out_dtype = x_nchw.dtype

    bn, t = _choose_tiling(n, c, hw, in_itemsize)
    grid = (-(-n // bn), -(-hw // t))

    x2 = x_nchw.reshape(n, c, hw)                  # contiguous reshape: free
    w2 = weight.reshape(c, 1).astype(jnp.float32)

    # VMEM budget: double-buffered in/out blocks + in-kernel f32 temporaries
    # + weight + slack.  Floor at 32 MiB (a raise over v5e's 16 MiB default,
    # the default on v6e/v7x), cap at 64 MiB.
    blk = bn * c * t
    vmem = (2 * blk * in_itemsize            # input pipeline buffers
            + 2 * blk * out_dtype.itemsize   # output pipeline buffers
            + 2 * blk * 4                    # f32 temporaries inside the body
            + c * 8 + (4 << 20))             # weight + slack
    vmem = int(min(max(vmem, 32 << 20), 64 << 20))

    out = pl.pallas_call(
        functools.partial(_l2norm_kernel, eps=eps),
        out_shape=jax.ShapeDtypeStruct((n, c, hw), out_dtype),
        grid=grid,
        in_specs=[pl.BlockSpec((bn, c, t), lambda i, j: (i, 0, j)),
                  pl.BlockSpec((c, 1), lambda i, j: (0, 0))],
        out_specs=pl.BlockSpec((bn, c, t), lambda i, j: (i, 0, j)),
        compiler_params=pltpu.CompilerParams(
            dimension_semantics=("parallel", "parallel"),
            vmem_limit_bytes=vmem),
    )(x2, w2)
    return out.reshape(n, c, h, w)


# --------------------------- pure-JAX reference ---------------------------- #

def ref_l2norm(x, weight, eps=EPS):
    xf = x.astype(jnp.float32)
    norm = jnp.sqrt(jnp.sum(xf * xf, axis=1, keepdims=True)) + eps
    return (xf / norm * weight.reshape(1, -1, 1, 1)).astype(x.dtype)


# --------------------------------- main ------------------------------------ #

if __name__ == "__main__":
    key = jax.random.PRNGKey(0)
    k0, k1, k2 = jax.random.split(key, 3)

    C = 512                                  # module default: input_channels=512
    SCALE = 20.0                             # reset_parameters(): weight = scale
    # constant-20 init per the module, plus a small perturbation so the
    # per-channel broadcast is actually exercised.
    weight = SCALE + 0.1 * jax.random.normal(k1, (C,), jnp.float32)

    l2norm_jit = jax.jit(l2norm)

    # Test 1: lane-aligned H*W (16x16), batch of 2 (exercises >=2 grid steps).
    x_a = jax.random.normal(k0, (2, C, 16, 16), jnp.float32)
    out_a = jax.block_until_ready(l2norm_jit(x_a, weight))
    np.testing.assert_allclose(np.asarray(out_a), np.asarray(ref_l2norm(x_a, weight)),
                               rtol=1e-5, atol=1e-5)

    # Test 2: non-128-divisible H*W (19x19 = 361), batch of 1 — exercises the
    # masked-tail spatial block and the spatial-split path for grid >= 2.
    x_b = jax.random.normal(k2, (1, C, 19, 19), jnp.float32)
    out_b = jax.block_until_ready(l2norm_jit(x_b, weight))
    np.testing.assert_allclose(np.asarray(out_b), np.asarray(ref_l2norm(x_b, weight)),
                               rtol=1e-5, atol=1e-5)

    print("KERNEL_OK")
</pallas_src>

<mosaic_0001>
module attributes {stable_mosaic.version = 11 : i64} {
  func.func @_l2norm_kernel(%arg0: i32, %arg1: i32, %arg2: memref<1x512x256xf32, #tpu.memory_space<vmem>>, %arg3: memref<512x1xf32, #tpu.memory_space<vmem>>, %arg4: memref<1x512x256xf32, #tpu.memory_space<vmem>>) attributes {dimension_semantics = [#tpu.dimension_semantics<parallel>, #tpu.dimension_semantics<parallel>], iteration_bounds = array<i64: 2, 1>, scalar_prefetch = 0 : i64, scratch_operands = 0 : i64, tpu.core_type = #tpu.core_type<tc>, window_params = [{transform_indices = @transform_0, window_bounds = array<i64: 1, 512, 256>}, {pipeline_mode = #tpu.pipeline_mode<synchronous>, transform_indices = @transform_1, window_bounds = array<i64: 512, 1>}, {transform_indices = @transform_2, window_bounds = array<i64: 1, 512, 256>}]} {
    %c0 = arith.constant 0 : index
    %c0_0 = arith.constant 0 : index
    %c0_1 = arith.constant 0 : index
    %0 = vector.load %arg2[%c0, %c0_0, %c0_1] : memref<1x512x256xf32, #tpu.memory_space<vmem>>, vector<1x512x256xf32>
    %1 = arith.mulf %0, %0 : vector<1x512x256xf32>
    %cst = arith.constant dense<0.000000e+00> : vector<1x256xf32>
    %2 = vector.multi_reduction <add>, %1, %cst [1] : vector<1x512x256xf32> to vector<1x256xf32>
    %3 = vector.shape_cast %2 : vector<1x256xf32> to vector<1x1x256xf32>
    %4 = math.sqrt %3 : vector<1x1x256xf32>
    %cst_2 = arith.constant 1.000000e-10 : f32
    %5 = vector.broadcast %cst_2 : f32 to vector<1x1x256xf32>
    %6 = arith.addf %4, %5 : vector<1x1x256xf32>
    %7 = tpu.reciprocal %6 : vector<1x1x256xf32> -> vector<1x1x256xf32>
    %c0_3 = arith.constant 0 : index
    %c0_4 = arith.constant 0 : index
    %8 = vector.load %arg3[%c0_3, %c0_4] : memref<512x1xf32, #tpu.memory_space<vmem>>, vector<512x1xf32>
    %9 = vector.shape_cast %8 : vector<512x1xf32> to vector<1x512x1xf32>
    %10 = vector.broadcast %9 : vector<1x512x1xf32> to vector<1x512x256xf32>
    %11 = vector.broadcast %7 : vector<1x1x256xf32> to vector<1x512x256xf32>
    %12 = arith.mulf %10, %11 : vector<1x512x256xf32>
    %13 = arith.mulf %0, %12 : vector<1x512x256xf32>
    %c0_5 = arith.constant 0 : index
    %c0_6 = arith.constant 0 : index
    %c0_7 = arith.constant 0 : index
    %14 = vector.load %arg4[%c0_5, %c0_6, %c0_7] : memref<1x512x256xf32, #tpu.memory_space<vmem>>, vector<1x512x256xf32>
    tpu.vector_store %arg4[%c0_5, %c0_6, %c0_7], %13 {strides = array<i32>} : memref<1x512x256xf32, #tpu.memory_space<vmem>>, vector<1x512x256xf32>,
    return
  }
  func.func @transform_0(%arg0: i32, %arg1: i32) -> (i32, i32, i32) {
    %c0_i32 = arith.constant 0 : i32
    %c0_i32_0 = arith.constant 0 : i32
    return %arg0, %c0_i32, %arg1 : i32, i32, i32
  }
  func.func @transform_1(%arg0: i32, %arg1: i32) -> (i32, i32) {
    %c0_i32 = arith.constant 0 : i32
    %c0_i32_0 = arith.constant 0 : i32
    %c0_i32_1 = arith.constant 0 : i32
    return %c0_i32, %c0_i32_0 : i32, i32
  }
  func.func @transform_2(%arg0: i32, %arg1: i32) -> (i32, i32, i32) {
    %c0_i32 = arith.constant 0 : i32
    %c0_i32_0 = arith.constant 0 : i32
    return %arg0, %c0_i32, %arg1 : i32, i32, i32
  }
}

</mosaic_0001>

<bundles_post_ra>
// kernel: l2norm.1
= control target key start
LH: loop header
LB: loop body
LE: loop exit
PB: predicated region body
PF: predicated region fallthrough
CT: control target
= control target key end

     0   :  { %s1699_s9 = smov 0   ;;  %s1701_s10 = smov 0   ;;  %s2667_s0 = inlined_call_operand.vmem [shape: f32[2,512,256], index: 0, kind: input, shape index: {}]   ;;  %s2668_s1 = inlined_call_operand.vmem [shape: f32[512,1], index: 1, kind: input, shape index: {}]   ;;  %s2669_s2 = inlined_call_operand.vmem [shape: f32[2,512,256], index: 2, kind: output, shape index: {}]  }
   0x1   :  { %s1703_s11 = smov 0  }
   0x2 LB: > { %s24_s12 = sadd.s32 1, %s1677_s10  ;;  %p1490_p0 = scmp.ge.s32.totalorder %s1681_s11, 1  ;;  %s1681_s11 = sphi %s1703_s11, %s12_s11   ;;  %s1677_s10 = sphi %s1701_s10, %s2671_s10   ;;  %s1673_s9 = sphi %s1699_s9, %s2670_s9  }
   0x3   : > { %p26_p1 = scmp.ge.s32.totalorder %s24_s12, 2  ;;  %p133_p2 = scmp.lt.s32.totalorder %s1681_s11, 3 }
   0x5   : > { %s2673_s12 = smov (%p26_p1, %s24_s12), 0  ;;  %p134_p3 = pnand %p1490_p0, %p133_p2 }
   0x6   : > { %p164_p4 = scmp.lt.s32.totalorder (!%p134_p3), %s1673_s9, 1 }
   0x7   : > { %137 = sbr.rel (%p134_p3) target bundleno = 328 (0x148), region = 28 }
   0xc   : > { %v635_v0 = vld [vmem:[%s2668_s1 + $0x20] sm:$0xff]  ;;  %v633_v1 = vld [vmem:[%s2668_s1 + $0x10] sm:$0xff]  ;;  %v1683_v3 = vmov 0   ;;  %s2675_s9 = smov (!%p164_p4, %s1673_s9), 1  ;;  %v636_v4 = vld [vmem:[%s2668_s1 + $0x28] sm:$0xff] }
   0xd   : > { %v631_v2 = vld [vmem:[%s2668_s1] sm:$0xff]  ;;  %1526 = vset.pattern.permute.xlu2 %v1683_v3  ;;  %1525 = vset.pattern.permute.xlu1 %v1683_v3  ;;  %s1497_s19 = sshll.u32 %s2675_s9, 10  ;;  %v634_v5 = vld [vmem:[%s2668_s1 + $0x18] sm:$0xff]  ;;  %v632_v6 = vld [vmem:[%s2668_s1 + $0x8] sm:$0xff] }
   0xe   : > { %1524 = vset.pattern.permute.xlu0 %v1683_v3  ;;  %717 = vperm.xlu2 %1526, %v635_v0   ;;  %s1737_s24 = scalar_lea.vmem %s2667_s0, %s1497_s19  ;;  %v639_v40 = vld [vmem:[%s2668_s1 + $0x40] sm:$0xff]  ;;  %v638_v44 = vld [vmem:[%s2668_s1 + $0x38] sm:$0xff]  ;;  %v637_v45 = vld [vmem:[%s2668_s1 + $0x30] sm:$0xff]  ;;  %s2126_s13 = scalar_lea.vmem %s2669_s2, %s1497_s19 }
   0xf   : > { %707 = vperm.xlu1 %1525, %v633_v1   ;;  %697 = vperm.xlu0 %1524, %v631_v2   ;;  %v183_v7 = vld [vmem:[%s1737_s24] sm:$0xff]  ;;  %v184_v8 = vld [vmem:[%s1737_s24 + $0x8] sm:$0xff]  ;;  %v185_v9 = vld [vmem:[%s1737_s24 + $0x10] sm:$0xff] }
  0x10   : > { %v186_v10 = vld [vmem:[%s1737_s24 + $0x18] sm:$0xff]  ;;  %v187_v11 = vld [vmem:[%s1737_s24 + $0x20] sm:$0xff]  ;;  %v188_v12 = vld [vmem:[%s1737_s24 + $0x28] sm:$0xff]  ;;  %v311_v13 = vmul.f32 %v183_v7, %v183_v7  ;;  %v312_v14 = vmul.f32 %v184_v8, %v184_v8  ;;  %v313_v15 = vmul.f32 %v185_v9, %v185_v9 }
  0x11   : > { %v189_v16 = vld [vmem:[%s1737_s24 + $0x30] sm:$0xff]  ;;  %v190_v17 = vld [vmem:[%s1737_s24 + $0x38] sm:$0xff]  ;;  %v191_v18 = vld [vmem:[%s1737_s24 + $0x40] sm:$0xff]  ;;  %v314_v19 = vmul.f32 %v186_v10, %v186_v10  ;;  %v315_v20 = vmul.f32 %v187_v11, %v187_v11  ;;  %v316_v21 = vmul.f32 %v188_v12, %v188_v12 }
  0x12   : > { %v192_v22 = vld [vmem:[%s1737_s24 + $0x48] sm:$0xff]  ;;  %v317_v23 = vmul.f32 %v189_v16, %v189_v16  ;;  %v439_v24 = vadd.f32 %v313_v15, %v311_v13  ;;  %v193_v25 = vld [vmem:[%s1737_s24 + $0x50] sm:$0xff]  ;;  %v318_v26 = vmul.f32 %v190_v17, %v190_v17  ;;  %v194_v28 = vld [vmem:[%s1737_s24 + $0x58] sm:$0xff]  ;;  %v319_v29 = vmul.f32 %v191_v18, %v191_v18 }
  0x13   : > { %v508_v27 = vadd.f32 %v314_v19, %v312_v14  ;;  %v195_v31 = vld [vmem:[%s1737_s24 + $0x60] sm:$0xff]  ;;  %v320_v32 = vmul.f32 %v192_v22, %v192_v22  ;;  %v196_v34 = vld [vmem:[%s1737_s24 + $0x68] sm:$0xff]  ;;  %v321_v35 = vmul.f32 %v193_v25, %v193_v25  ;;  %v197_v37 = vld [vmem:[%s1737_s24 + $0x70] sm:$0xff]  ;;  %v322_v38 = vmul.f32 %v194_v28, %v194_v28 }
  0x14   : > { %v440_v30 = vadd.f32 %v439_v24, %v315_v20  ;;  %v198_v41 = vld [vmem:[%s1737_s24 + $0x78] sm:$0xff]  ;;  %v323_v42 = vmul.f32 %v195_v31, %v195_v31  ;;  %v199_v46 = vld [vmem:[%s1737_s24 + $0x80] sm:$0xff]  ;;  %v324_v47 = vmul.f32 %v196_v34, %v196_v34  ;;  %v200_v49 = vld [vmem:[%s1737_s24 + $0x88] sm:$0xff]  ;;  %v325_v50 = vmul.f32 %v197_v37, %v197_v37 }
  0x15   : > { %v509_v33 = vadd.f32 %v508_v27, %v316_v21  ;;  %v201_v52 = vld [vmem:[%s1737_s24 + $0x90] sm:$0xff]  ;;  %v326_v53 = vmul.f32 %v198_v41, %v198_v41  ;;  %v202_v55 = vld [vmem:[%s1737_s24 + $0x98] sm:$0xff]  ;;  %v327_v56 = vmul.f32 %v199_v46, %v199_v46  ;;  %v203_v58 = vld [vmem:[%s1737_s24 + $0xa0] sm:$0xff]  ;;  %v328_v59 = vmul.f32 %v200_v49, %v200_v49 }
  0x16   : > { %722 = vperm.xlu2 %1526, %v636_v4   ;;  %v441_v36 = vadd.f32 %v440_v30, %v317_v23  ;;  %v204_v61 = vld [vmem:[%s1737_s24 + $0xa8] sm:$0xff]  ;;  %v329_v62 = vmul.f32 %v201_v52, %v201_v52  ;;  %v205_v0 = vld [vmem:[%s1737_s24 + $0xb0] sm:$0xff]  ;;  %v330_v1 = vmul.f32 %v202_v55, %v202_v55  ;;  %v642_v3 = vld [vmem:[%s2668_s1 + $0x58] sm:$0xff] }
  0x17   : > { %712 = vperm.xlu1 %1525, %v634_v5   ;;  %702 = vperm.xlu0 %1524, %v632_v6   ;;  %v510_v39 = vadd.f32 %v509_v33, %v318_v26  ;;  %v206_v4 = vld [vmem:[%s1737_s24 + $0xb8] sm:$0xff]  ;;  %v331_v5 = vmul.f32 %v203_v58, %v203_v58  ;;  %v641_v7 = vld [vmem:[%s2668_s1 + $0x50] sm:$0xff]  ;;  %v640_v8 = vld [vmem:[%s2668_s1 + $0x48] sm:$0xff]  ;;  %v332_v10 = vmul.f32 %v204_v61, %v204_v61 }
  0x18   : > { %v442_v43 = vadd.f32 %v441_v36, %v319_v29  ;;  %v207_v9 = vld [vmem:[%s1737_s24 + $0xc0] sm:$0xff]  ;;  %v208_v12 = vld [vmem:[%s1737_s24 + $0xc8] sm:$0xff]  ;;  %v333_v13 = vmul.f32 %v205_v0, %v205_v0  ;;  %v209_v15 = vld [vmem:[%s1737_s24 + $0xd0] sm:$0xff]  ;;  %v334_v16 = vmul.f32 %v206_v4, %v206_v4 }
  0x19   : > { %v511_v48 = vadd.f32 %v510_v39, %v320_v32  ;;  %v210_v18 = vld [vmem:[%s1737_s24 + $0xd8] sm:$0xff]  ;;  %v335_v19 = vmul.f32 %v207_v9, %v207_v9  ;;  %v211_v21 = vld [vmem:[%s1737_s24 + $0xe0] sm:$0xff]  ;;  %v336_v22 = vmul.f32 %v208_v12, %v208_v12  ;;  %v212_v24 = vld [vmem:[%s1737_s24 + $0xe8] sm:$0xff]  ;;  %v337_v25 = vmul.f32 %v209_v15, %v209_v15 }
  0x1a   : > { %v443_v51 = vadd.f32 %v442_v43, %v321_v35  ;;  %v213_v27 = vld [vmem:[%s1737_s24 + $0xf0] sm:$0xff]  ;;  %v338_v28 = vmul.f32 %v210_v18, %v210_v18  ;;  %v214_v31 = vld [vmem:[%s1737_s24 + $0xf8] sm:$0xff]  ;;  %v339_v32 = vmul.f32 %v211_v21, %v211_v21  ;;  %v644_v34 = vld [vmem:[%s2668_s1 + $0x68] sm:$0xff]  ;;  %v340_v37 = vmul.f32 %v212_v24, %v212_v24 }
  0x1b   : > { %v512_v54 = vadd.f32 %v511_v48, %v322_v38  ;;  %v645_v30 = vld [vmem:[%s2668_s1 + $0x70] sm:$0xff]  ;;  %v643_v35 = vld [vmem:[%s2668_s1 + $0x60] sm:$0xff]  ;;  %v216_v39 = vld [vmem:[%s1737_s24 + $0x108] sm:$0xff]  ;;  %v342_v43 = vmul.f32 %v214_v31, %v214_v31 }
  0x1c   : > { %v444_v57 = vadd.f32 %v443_v51, %v323_v42  ;;  %v215_v36 = vld [vmem:[%s1737_s24 + $0x100] sm:$0xff]  ;;  %v217_v42 = vld [vmem:[%s1737_s24 + $0x110] sm:$0xff]  ;;  %v344_v49 = vmul.f32 %v216_v39, %v216_v39  ;;  %v220_v51 = vld [vmem:[%s1737_s24 + $0x128] sm:$0xff] }
  0x1d   : > { %v513_v60 = vadd.f32 %v512_v54, %v324_v47  ;;  %v343_v46 = vmul.f32 %v215_v36, %v215_v36  ;;  %v219_v48 = vld [vmem:[%s1737_s24 + $0x120] sm:$0xff]  ;;  %v345_v52 = vmul.f32 %v217_v42, %v217_v42  ;;  %v221_v54 = vld [vmem:[%s1737_s24 + $0x130] sm:$0xff]  ;;  %v222_v58 = vld [vmem:[%s1737_s24 + $0x138] sm:$0xff]  ;;  %v348_v0 = vmul.f32 %v220_v51, %v220_v51 }
  0x1e   : > { %737 = vperm.xlu2 %1526, %v639_v40   ;;  %v445_v63 = vadd.f32 %v444_v57, %v325_v50  ;;  %v341_v40 = vmul.f32 %v213_v27, %v213_v27  ;;  %v648_v57 = vld [vmem:[%s2668_s1 + $0x88] sm:$0xff]  ;;  %v647_v61 = vld [vmem:[%s2668_s1 + $0x80] sm:$0xff]  ;;  %v230_v21 = vld [vmem:[%s1737_s24 + $0x178] sm:$0xff] }
  0x1f   : > { %732 = vperm.xlu1 %1525, %v638_v44   ;;  %727 = vperm.xlu0 %1524, %v637_v45   ;;  %v514_v2 = vadd.f32 %v513_v60, %v326_v53  ;;  %v218_v45 = vld [vmem:[%s1737_s24 + $0x118] sm:$0xff]  ;;  %v653_v51 = vld [vmem:[%s2668_s1 + $0xb0] sm:$0xff] }
  0x20   : > { %v446_v6 = vadd.f32 %v445_v63, %v327_v56  ;;  %v346_v55 = vmul.f32 %v218_v45, %v218_v45  ;;  %v223_v63 = vld [vmem:[%s1737_s24 + $0x140] sm:$0xff]  ;;  %v650_v24 = vld [vmem:[%s2668_s1 + $0x98] sm:$0xff] }
  0x21   : > { %v515_v11 = vadd.f32 %v514_v2, %v328_v59  ;;  %v347_v59 = vmul.f32 %v219_v48, %v219_v48  ;;  %v224_v2 = vld [vmem:[%s1737_s24 + $0x148] sm:$0xff]  ;;  %v351_v9 = vmul.f32 %v223_v63, %v223_v63  ;;  %v238_v48 = vld [vmem:[%s1737_s24 + $0x1b8] sm:$0xff] }
  0x22   : > { %v447_v14 = vadd.f32 %v446_v6, %v329_v62  ;;  %v646_v62 = vld [vmem:[%s2668_s1 + $0x78] sm:$0xff]  ;;  %v350_v6 = vmul.f32 %v222_v58, %v222_v58  ;;  %v352_v12 = vmul.f32 %v224_v2, %v224_v2 }
  0x23   : > { %v516_v17 = vadd.f32 %v515_v11, %v330_v1  ;;  %v227_v11 = vld [vmem:[%s1737_s24 + $0x160] sm:$0xff] }
  0x24   : > { %v448_v20 = vadd.f32 %v447_v14, %v331_v5  ;;  %v225_v5 = vld [vmem:[%s1737_s24 + $0x150] sm:$0xff]  ;;  %v228_v14 = vld [vmem:[%s1737_s24 + $0x168] sm:$0xff] }
  0x25   : > { %v517_v23 = vadd.f32 %v516_v17, %v332_v10  ;;  %v353_v15 = vmul.f32 %v225_v5, %v225_v5  ;;  %v229_v17 = vld [vmem:[%s1737_s24 + $0x170] sm:$0xff]  ;;  %v356_v27 = vmul.f32 %v228_v14, %v228_v14  ;;  %v246_v14 = vld [vmem:[%s1737_s24 + $0x1f8] sm:$0xff] }
  0x26   : > { %752 = vperm.xlu2 %1526, %v642_v3   ;;  %v449_v26 = vadd.f32 %v448_v20, %v333_v13  ;;  %v349_v3 = vmul.f32 %v221_v54, %v221_v54  ;;  %v651_v20 = vld [vmem:[%s2668_s1 + $0xa0] sm:$0xff] }
  0x27   : > { %747 = vperm.xlu1 %1525, %v641_v7   ;;  %742 = vperm.xlu0 %1524, %v640_v8   ;;  %v518_v29 = vadd.f32 %v517_v23, %v334_v16  ;;  %v226_v8 = vld [vmem:[%s1737_s24 + $0x158] sm:$0xff] }
  0x28   : > { %v450_v33 = vadd.f32 %v449_v26, %v335_v19  ;;  %v354_v18 = vmul.f32 %v226_v8, %v226_v8  ;;  %v231_v26 = vld [vmem:[%s1737_s24 + $0x180] sm:$0xff] }
  0x29   : > { %v519_v38 = vadd.f32 %v518_v29, %v336_v22  ;;  %v355_v22 = vmul.f32 %v227_v11, %v227_v11  ;;  %v232_v29 = vld [vmem:[%s1737_s24 + $0x188] sm:$0xff]  ;;  %v359_v36 = vmul.f32 %v231_v26, %v231_v26 }
  0x2a   : > { %v451_v41 = vadd.f32 %v450_v33, %v337_v25  ;;  %v649_v25 = vld [vmem:[%s2668_s1 + $0x90] sm:$0xff]  ;;  %v358_v33 = vmul.f32 %v230_v21, %v230_v21  ;;  %v360_v39 = vmul.f32 %v232_v29, %v232_v29 }
  0x2b   : > { %v520_v44 = vadd.f32 %v519_v38, %v338_v28  ;;  %v235_v38 = vld [vmem:[%s1737_s24 + $0x1a0] sm:$0xff] }
  0x2c   : > { %v452_v47 = vadd.f32 %v451_v41, %v339_v32  ;;  %v233_v32 = vld [vmem:[%s1737_s24 + $0x190] sm:$0xff]  ;;  %v236_v41 = vld [vmem:[%s1737_s24 + $0x1a8] sm:$0xff] }
  0x2d   : > { %v521_v50 = vadd.f32 %v520_v44, %v340_v37  ;;  %v361_v42 = vmul.f32 %v233_v32, %v233_v32  ;;  %v237_v44 = vld [vmem:[%s1737_s24 + $0x1b0] sm:$0xff]  ;;  %v364_v54 = vmul.f32 %v236_v41, %v236_v41 }
  0x2e   : > { %767 = vperm.xlu2 %1526, %v645_v30   ;;  %v453_v53 = vadd.f32 %v452_v47, %v341_v40  ;;  %v357_v30 = vmul.f32 %v229_v17, %v229_v17  ;;  %v654_v47 = vld [vmem:[%s2668_s1 + $0xb8] sm:$0xff]  ;;  %v247_v17 = vld [vmem:[%s1737_s24 + $0x200] sm:$0xff] }
  0x2f   : > { %762 = vperm.xlu1 %1525, %v644_v34   ;;  %757 = vperm.xlu0 %1524, %v643_v35   ;;  %v522_v56 = vadd.f32 %v521_v50, %v342_v43  ;;  %v234_v35 = vld [vmem:[%s1737_s24 + $0x198] sm:$0xff]  ;;  %v375_v26 = vmul.f32 %v247_v17, %v247_v17 }
  0x30   : > { %v454_v60 = vadd.f32 %v453_v53, %v343_v46  ;;  %v362_v45 = vmul.f32 %v234_v35, %v234_v35  ;;  %v239_v53 = vld [vmem:[%s1737_s24 + $0x1c0] sm:$0xff]  ;;  %v253_v35 = vld [vmem:[%s1737_s24 + $0x230] sm:$0xff] }
  0x31   : > { %v523_v1 = vadd.f32 %v522_v56, %v344_v49  ;;  %v363_v49 = vmul.f32 %v235_v38, %v235_v38  ;;  %v240_v56 = vld [vmem:[%s1737_s24 + $0x1c8] sm:$0xff]  ;;  %v367_v63 = vmul.f32 %v239_v53, %v239_v53  ;;  %v659_v38 = vld [vmem:[%s2668_s1 + $0xe0] sm:$0xff] }
  0x32   : > { %v455_v4 = vadd.f32 %v454_v60, %v345_v52  ;;  %v652_v52 = vld [vmem:[%s2668_s1 + $0xa8] sm:$0xff]  ;;  %v366_v60 = vmul.f32 %v238_v48, %v238_v48 }
  0x33   : > { %v524_v7 = vadd.f32 %v523_v1, %v346_v55  ;;  %v368_v1 = vmul.f32 %v240_v56, %v240_v56 }
  0x34   : > { %v456_v10 = vadd.f32 %v455_v4, %v347_v59  ;;  %v241_v59 = vld [vmem:[%s1737_s24 + $0x1d0] sm:$0xff] }
  0x35   : > { %v525_v13 = vadd.f32 %v524_v7, %v348_v0  ;;  %v369_v4 = vmul.f32 %v241_v59, %v241_v59 }
  0x36   : > { %782 = vperm.xlu2 %1526, %v648_v57   ;;  %v457_v16 = vadd.f32 %v456_v10, %v349_v3  ;;  %v365_v57 = vmul.f32 %v237_v44, %v237_v44  ;;  %v243_v3 = vld [vmem:[%s1737_s24 + $0x1e0] sm:$0xff]  ;;  %v245_v10 = vld [vmem:[%s1737_s24 + $0x1f0] sm:$0xff] }
  0x37   : > { %777 = vperm.xlu1 %1525, %v647_v61   ;;  %772 = vperm.xlu0 %1524, %v646_v62   ;;  %v526_v19 = vadd.f32 %v525_v13, %v350_v6  ;;  %v242_v62 = vld [vmem:[%s1737_s24 + $0x1d8] sm:$0xff]  ;;  %v244_v6 = vld [vmem:[%s1737_s24 + $0x1e8] sm:$0xff]  ;;  %v655_v13 = vld [vmem:[%s2668_s1 + $0xc0] sm:$0xff]  ;;  %v373_v21 = vmul.f32 %v245_v10, %v245_v10 }
  0x38   : > { %v458_v23 = vadd.f32 %v457_v16, %v351_v9  ;;  %v370_v7 = vmul.f32 %v242_v62, %v242_v62  ;;  %v657_v9 = vld [vmem:[%s2668_s1 + $0xd0] sm:$0xff] }
  0x39   : > { %v527_v28 = vadd.f32 %v526_v19, %v352_v12  ;;  %v656_v12 = vld [vmem:[%s2668_s1 + $0xc8] sm:$0xff]  ;;  %v261_v62 = vld [vmem:[%s1737_s24 + $0x270] sm:$0xff] }
  0x3a   : > { %v459_v31 = vadd.f32 %v458_v23, %v353_v15  ;;  %v371_v15 = vmul.f32 %v243_v3, %v243_v3  ;;  %v249_v23 = vld [vmem:[%s1737_s24 + $0x210] sm:$0xff]  ;;  %v262_v3 = vld [vmem:[%s1737_s24 + $0x278] sm:$0xff]  ;;  %v389_v10 = vmul.f32 %v261_v62, %v261_v62 }
  0x3b   : > { %v528_v34 = vadd.f32 %v527_v28, %v354_v18  ;;  %v372_v18 = vmul.f32 %v244_v6, %v244_v6  ;;  %v251_v28 = vld [vmem:[%s1737_s24 + $0x220] sm:$0xff]  ;;  %v377_v32 = vmul.f32 %v249_v23, %v249_v23 }
  0x3c   : > { %v460_v37 = vadd.f32 %v459_v31, %v355_v22  ;;  %v252_v31 = vld [vmem:[%s1737_s24 + $0x228] sm:$0xff]  ;;  %v379_v41 = vmul.f32 %v251_v28, %v251_v28  ;;  %v263_v6 = vld [vmem:[%s1737_s24 + $0x280] sm:$0xff]  ;;  %v665_v28 = vld [vmem:[%s2668_s1 + $0x110] sm:$0xff] }
  0x3d   : > { %v529_v40 = vadd.f32 %v528_v34, %v356_v27  ;;  %v660_v34 = vld [vmem:[%s2668_s1 + $0xe8] sm:$0xff]  ;;  %v380_v44 = vmul.f32 %v252_v31, %v252_v31 }
  0x3e   : > { %797 = vperm.xlu2 %1526, %v651_v20   ;;  %v461_v43 = vadd.f32 %v460_v37, %v357_v30  ;;  %v248_v20 = vld [vmem:[%s1737_s24 + $0x208] sm:$0xff] }
  0x3f   : > { %792 = vperm.xlu1 %1525, %v650_v24   ;;  %787 = vperm.xlu0 %1524, %v649_v25   ;;  %v530_v46 = vadd.f32 %v529_v40, %v358_v33  ;;  %v374_v24 = vmul.f32 %v246_v14, %v246_v14  ;;  %v250_v25 = vld [vmem:[%s1737_s24 + $0x218] sm:$0xff]  ;;  %v376_v29 = vmul.f32 %v248_v20, %v248_v20 }
  0x40   : > { %v462_v50 = vadd.f32 %v461_v43, %v359_v36  ;;  %v378_v36 = vmul.f32 %v250_v25, %v250_v25  ;;  %v254_v40 = vld [vmem:[%s1737_s24 + $0x238] sm:$0xff]  ;;  %v255_v43 = vld [vmem:[%s1737_s24 + $0x240] sm:$0xff]  ;;  %v269_v25 = vld [vmem:[%s1737_s24 + $0x2b0] sm:$0xff] }
  0x41   : > { %v531_v55 = vadd.f32 %v530_v46, %v360_v39  ;;  %v658_v39 = vld [vmem:[%s2668_s1 + $0xd8] sm:$0xff]  ;;  %v256_v46 = vld [vmem:[%s1737_s24 + $0x248] sm:$0xff]  ;;  %v383_v53 = vmul.f32 %v255_v43, %v255_v43 }
  0x42   : > { %v463_v58 = vadd.f32 %v462_v50, %v361_v42  ;;  %v382_v50 = vmul.f32 %v254_v40, %v254_v40  ;;  %v384_v56 = vmul.f32 %v256_v46, %v256_v46 }
  0x43   : > { %v532_v61 = vadd.f32 %v531_v55, %v362_v45  ;;  %v259_v55 = vld [vmem:[%s1737_s24 + $0x260] sm:$0xff] }
  0x44   : > { %v464_v0 = vadd.f32 %v463_v58, %v363_v49  ;;  %v257_v49 = vld [vmem:[%s1737_s24 + $0x250] sm:$0xff]  ;;  %v260_v58 = vld [vmem:[%s1737_s24 + $0x268] sm:$0xff] }
  0x45   : > { %v533_v2 = vadd.f32 %v532_v61, %v364_v54  ;;  %v385_v59 = vmul.f32 %v257_v49, %v257_v49  ;;  %v663_v61 = vld [vmem:[%s2668_s1 + $0x100] sm:$0xff] }
  0x46   : > { %812 = vperm.xlu2 %1526, %v654_v47   ;;  %v465_v5 = vadd.f32 %v464_v0, %v365_v57  ;;  %v381_v47 = vmul.f32 %v253_v35, %v253_v35 }
  0x47   : > { %807 = vperm.xlu1 %1525, %v653_v51   ;;  %802 = vperm.xlu0 %1524, %v652_v52   ;;  %v534_v8 = vadd.f32 %v533_v2, %v366_v60  ;;  %v258_v52 = vld [vmem:[%s1737_s24 + $0x258] sm:$0xff]  ;;  %v661_v2 = vld [vmem:[%s2668_s1 + $0xf0] sm:$0xff] }
  0x48   : > { %v466_v11 = vadd.f32 %v465_v5, %v367_v63  ;;  %v386_v63 = vmul.f32 %v258_v52, %v258_v52 }
  0x49   : > { %v535_v16 = vadd.f32 %v534_v8, %v368_v1  ;;  %v662_v1 = vld [vmem:[%s2668_s1 + $0xf8] sm:$0xff] }
  0x4a   : > { %v467_v19 = vadd.f32 %v466_v11, %v369_v4  ;;  %v387_v4 = vmul.f32 %v259_v55, %v259_v55 }
  0x4b   : > { %v536_v22 = vadd.f32 %v535_v16, %v370_v7  ;;  %v388_v7 = vmul.f32 %v260_v58, %v260_v58  ;;  %v391_v16 = vmul.f32 %v263_v6, %v263_v6  ;;  %v282_v6 = vld [vmem:[%s1737_s24 + $0x318] sm:$0xff] }
  0x4c   : > { %v468_v27 = vadd.f32 %v467_v19, %v371_v15  ;;  %v266_v15 = vld [vmem:[%s1737_s24 + $0x298] sm:$0xff] }
  0x4d   : > { %v537_v30 = vadd.f32 %v536_v22, %v372_v18  ;;  %v267_v18 = vld [vmem:[%s1737_s24 + $0x2a0] sm:$0xff] }
  0x4e   : > { %827 = vperm.xlu2 %1526, %v657_v9   ;;  %v469_v33 = vadd.f32 %v468_v27, %v373_v21  ;;  %v264_v9 = vld [vmem:[%s1737_s24 + $0x288] sm:$0xff]  ;;  %v395_v31 = vmul.f32 %v267_v18, %v267_v18 }
  0x4f   : > { %822 = vperm.xlu1 %1525, %v656_v12   ;;  %817 = vperm.xlu0 %1524, %v655_v13   ;;  %v538_v37 = vadd.f32 %v537_v30, %v374_v24  ;;  %v265_v12 = vld [vmem:[%s1737_s24 + $0x290] sm:$0xff]  ;;  %v390_v13 = vmul.f32 %v262_v3, %v262_v3  ;;  %v392_v19 = vmul.f32 %v264_v9, %v264_v9  ;;  %v268_v21 = vld [vmem:[%s1737_s24 + $0x2a8] sm:$0xff]  ;;  %v666_v24 = vld [vmem:[%s2668_s1 + $0x118] sm:$0xff] }
  0x50   : > { %v470_v42 = vadd.f32 %v469_v33, %v375_v26  ;;  %v393_v22 = vmul.f32 %v265_v12, %v265_v12  ;;  %v394_v26 = vmul.f32 %v266_v15, %v266_v15  ;;  %v270_v30 = vld [vmem:[%s1737_s24 + $0x2b8] sm:$0xff]  ;;  %v271_v33 = vld [vmem:[%s1737_s24 + $0x2c0] sm:$0xff]  ;;  %v281_v3 = vld [vmem:[%s1737_s24 + $0x310] sm:$0xff] }
  0x51   : > { %v539_v45 = vadd.f32 %v538_v37, %v376_v29  ;;  %v664_v29 = vld [vmem:[%s2668_s1 + $0x108] sm:$0xff]  ;;  %v397_v37 = vmul.f32 %v269_v25, %v269_v25  ;;  %v398_v40 = vmul.f32 %v270_v30, %v270_v30  ;;  %v399_v43 = vmul.f32 %v271_v33, %v271_v33  ;;  %v283_v9 = vld [vmem:[%s1737_s24 + $0x320] sm:$0xff]  ;;  %v285_v15 = vld [vmem:[%s1737_s24 + $0x330] sm:$0xff] }
  0x52   : > { %v471_v48 = vadd.f32 %v470_v42, %v377_v32  ;;  %v274_v42 = vld [vmem:[%s1737_s24 + $0x2d8] sm:$0xff]  ;;  %v284_v12 = vld [vmem:[%s1737_s24 + $0x328] sm:$0xff] }
  0x53   : > { %v540_v51 = vadd.f32 %v539_v45, %v378_v36  ;;  %v272_v36 = vld [vmem:[%s1737_s24 + $0x2c8] sm:$0xff]  ;;  %v275_v45 = vld [vmem:[%s1737_s24 + $0x2e0] sm:$0xff]  ;;  %v402_v52 = vmul.f32 %v274_v42, %v274_v42  ;;  %v412_v25 = vmul.f32 %v284_v12, %v284_v12  ;;  %v1993_v12 = vld [vmem:[%s1737_s24 + $0x3b8] sm:$0xff] }
  0x54   : > { %v472_v54 = vadd.f32 %v471_v48, %v379_v41  ;;  %v400_v46 = vmul.f32 %v272_v36, %v272_v36  ;;  %v276_v48 = vld [vmem:[%s1737_s24 + $0x2e8] sm:$0xff] }
  0x55   : > { %v541_v57 = vadd.f32 %v540_v51, %v380_v44  ;;  %v277_v51 = vld [vmem:[%s1737_s24 + $0x2f0] sm:$0xff]  ;;  %v404_v62 = vmul.f32 %v276_v48, %v276_v48  ;;  %v672_v18 = vld [vmem:[%s2668_s1 + $0x148] sm:$0xff] }
  0x56   : > { %842 = vperm.xlu2 %1526, %v660_v34   ;;  %v473_v60 = vadd.f32 %v472_v54, %v381_v47  ;;  %v396_v34 = vmul.f32 %v268_v21, %v268_v21  ;;  %v669_v54 = vld [vmem:[%s2668_s1 + $0x130] sm:$0xff] }
  0x57   : > { %837 = vperm.xlu1 %1525, %v659_v38   ;;  %832 = vperm.xlu0 %1524, %v658_v39   ;;  %v542_v0 = vadd.f32 %v541_v57, %v382_v50  ;;  %v273_v39 = vld [vmem:[%s1737_s24 + $0x2d0] sm:$0xff]  ;;  %v403_v57 = vmul.f32 %v275_v45, %v275_v45 }
  0x58   : > { %v474_v5 = vadd.f32 %v473_v60, %v383_v53  ;;  %v401_v49 = vmul.f32 %v273_v39, %v273_v39  ;;  %v667_v60 = vld [vmem:[%s2668_s1 + $0x120] sm:$0xff] }
  0x59   : > { %v543_v8 = vadd.f32 %v542_v0, %v384_v56  ;;  %v278_v56 = vld [vmem:[%s1737_s24 + $0x2f8] sm:$0xff]  ;;  %v280_v0 = vld [vmem:[%s1737_s24 + $0x308] sm:$0xff] }
  0x5a   : > { %v475_v11 = vadd.f32 %v474_v5, %v385_v59  ;;  %v668_v59 = vld [vmem:[%s2668_s1 + $0x128] sm:$0xff] }
  0x5b   : > { %v544_v14 = vadd.f32 %v543_v8, %v386_v63 }
  0x5c   : > { %v476_v17 = vadd.f32 %v475_v11, %v387_v4  ;;  %v406_v4 = vmul.f32 %v278_v56, %v278_v56  ;;  %v296_v56 = vld [vmem:[%s1737_s24 + $0x388] sm:$0xff] }
  0x5d   : > { %v545_v20 = vadd.f32 %v544_v14, %v388_v7 }
  0x5e   : > { %857 = vperm.xlu2 %1526, %v663_v61   ;;  %v477_v23 = vadd.f32 %v476_v17, %v389_v10  ;;  %v279_v61 = vld [vmem:[%s1737_s24 + $0x300] sm:$0xff]  ;;  %v408_v10 = vmul.f32 %v280_v0, %v280_v0 }
  0x5f   : > { %852 = vperm.xlu1 %1525, %v662_v1   ;;  %847 = vperm.xlu0 %1524, %v661_v2   ;;  %v546_v27 = vadd.f32 %v545_v20, %v390_v13  ;;  %v405_v1 = vmul.f32 %v277_v51, %v277_v51  ;;  %v407_v7 = vmul.f32 %v279_v61, %v279_v61  ;;  %v673_v51 = vld [vmem:[%s2668_s1 + $0x150] sm:$0xff] }
  0x60   : > { %v478_v32 = vadd.f32 %v477_v23, %v391_v16  ;;  %v409_v13 = vmul.f32 %v281_v3, %v281_v3  ;;  %v410_v16 = vmul.f32 %v282_v6, %v282_v6  ;;  %v411_v20 = vmul.f32 %v283_v9, %v283_v9  ;;  %v670_v23 = vld [vmem:[%s2668_s1 + $0x138] sm:$0xff] }
  0x61   : > { %v547_v35 = vadd.f32 %v546_v27, %v392_v19  ;;  %v286_v19 = vld [vmem:[%s1737_s24 + $0x338] sm:$0xff]  ;;  %v288_v27 = vld [vmem:[%s1737_s24 + $0x348] sm:$0xff]  ;;  %v424_v3 = vmul.f32 %v296_v56, %v296_v56 }
  0x62   : > { %v479_v38 = vadd.f32 %v478_v32, %v393_v22  ;;  %v671_v22 = vld [vmem:[%s2668_s1 + $0x140] sm:$0xff]  ;;  %v414_v32 = vmul.f32 %v286_v19, %v286_v19 }
  0x63   : > { %v548_v41 = vadd.f32 %v547_v35, %v394_v26 }
  0x64   : > { %v480_v44 = vadd.f32 %v479_v38, %v395_v31  ;;  %v289_v31 = vld [vmem:[%s1737_s24 + $0x350] sm:$0xff]  ;;  %v416_v38 = vmul.f32 %v288_v27, %v288_v27 }
  0x65   : > { %v549_v47 = vadd.f32 %v548_v41, %v396_v34  ;;  %v290_v34 = vld [vmem:[%s1737_s24 + $0x358] sm:$0xff]  ;;  %v417_v41 = vmul.f32 %v289_v31, %v289_v31 }
  0x66   : > { %872 = vperm.xlu2 %1526, %v666_v24   ;;  %v481_v50 = vadd.f32 %v480_v44, %v397_v37  ;;  %v287_v24 = vld [vmem:[%s1737_s24 + $0x340] sm:$0xff]  ;;  %v418_v44 = vmul.f32 %v290_v34, %v290_v34 }
  0x67   : > { %867 = vperm.xlu1 %1525, %v665_v28   ;;  %862 = vperm.xlu0 %1524, %v664_v29   ;;  %v550_v53 = vadd.f32 %v549_v47, %v398_v40  ;;  %v413_v28 = vmul.f32 %v285_v15, %v285_v15  ;;  %v415_v35 = vmul.f32 %v287_v24, %v287_v24  ;;  %v291_v37 = vld [vmem:[%s1737_s24 + $0x360] sm:$0xff]  ;;  %v292_v40 = vld [vmem:[%s1737_s24 + $0x368] sm:$0xff]  ;;  %v294_v47 = vld [vmem:[%s1737_s24 + $0x378] sm:$0xff] }
  0x68   : > { %v1933_v55 = vpop.permute.xlu2 %717  ;;  %v482_v58 = vadd.f32 %v481_v50, %v399_v43  ;;  %v293_v43 = vld [vmem:[%s1737_s24 + $0x370] sm:$0xff]  ;;  %v419_v48 = vmul.f32 %v291_v37, %v291_v37  ;;  %v674_v50 = vld [vmem:[%s2668_s1 + $0x158] sm:$0xff]  ;;  %v430_v24 = vmul.f32 %v1993_v12, %v1993_v12 }
  0x69   : > { %v551_v63 = vadd.f32 %v550_v53, %v400_v46  ;;  %v675_v46 = vld [vmem:[%s2668_s1 + $0x160] sm:$0xff]  ;;  %v420_v53 = vmul.f32 %v292_v40, %v292_v40  ;;  %v677_v15 = vld [vmem:[%s2668_s1 + $0x170] sm:$0xff] }
  0x6a   : > { %v483_v2 = vadd.f32 %v482_v58, %v401_v49  ;;  %v309_v37 = vld [vmem:[%s1737_s24 + $0x3f0] sm:$0xff] }
  0x6b   : > { %v552_v5 = vadd.f32 %v551_v63, %v402_v52  ;;  %v295_v52 = vld [vmem:[%s1737_s24 + $0x380] sm:$0xff] }
  0x6c   : > { %v484_v8 = vadd.f32 %v483_v2, %v403_v57  ;;  %v421_v57 = vmul.f32 %v293_v43, %v293_v43  ;;  %v423_v63 = vmul.f32 %v295_v52, %v295_v52  ;;  %v299_v2 = vld [vmem:[%s1737_s24 + $0x3a0] sm:$0xff] }
  0x6d   : > { %v553_v11 = vadd.f32 %v552_v5, %v404_v62  ;;  %v298_v62 = vld [vmem:[%s1737_s24 + $0x398] sm:$0xff]  ;;  %v300_v5 = vld [vmem:[%s1737_s24 + $0x3a8] sm:$0xff] }
  0x6e   : > { %887 = vperm.xlu2 %1526, %v669_v54   ;;  %v485_v14 = vadd.f32 %v484_v8, %v405_v1  ;;  %v1987_v8 = vld [vmem:[%s1737_s24 + $0x3b0] sm:$0xff]  ;;  %v426_v9 = vmul.f32 %v298_v62, %v298_v62  ;;  %v683_v62 = vld [vmem:[%s2668_s1 + $0x1a0] sm:$0xff] }
  0x6f   : > { %882 = vperm.xlu1 %1525, %v668_v59   ;;  %877 = vperm.xlu0 %1524, %v667_v60   ;;  %v554_v17 = vadd.f32 %v553_v11, %v406_v4  ;;  %v297_v59 = vld [vmem:[%s1737_s24 + $0x390] sm:$0xff]  ;;  %v422_v60 = vmul.f32 %v294_v47, %v294_v47  ;;  %v678_v11 = vld [vmem:[%s2668_s1 + $0x178] sm:$0xff]  ;;  %v679_v47 = vld [vmem:[%s2668_s1 + $0x180] sm:$0xff] }
  0x70   : > { %v486_v21 = vadd.f32 %v485_v14, %v407_v7  ;;  %v1961_v30 = vpop.permute.xlu2 %722  ;;  %v425_v6 = vmul.f32 %v297_v59, %v297_v59  ;;  %v684_v59 = vld [vmem:[%s2668_s1 + $0x1a8] sm:$0xff] }
  0x71   : > { %v555_v26 = vadd.f32 %v554_v17, %v408_v10  ;;  %v303_v17 = vld [vmem:[%s1737_s24 + $0x3c0] sm:$0xff] }
  0x72   : > { %v487_v29 = vadd.f32 %v486_v21, %v409_v13  ;;  %v427_v13 = vmul.f32 %v299_v2, %v299_v2  ;;  %v429_v21 = vmul.f32 %v1987_v8, %v1987_v8  ;;  %v431_v27 = vmul.f32 %v303_v17, %v303_v17 }
  0x73   : > { %v556_v33 = vadd.f32 %v555_v26, %v410_v16  ;;  %v676_v16 = vld [vmem:[%s2668_s1 + $0x168] sm:$0xff]  ;;  %v306_v26 = vld [vmem:[%s1737_s24 + $0x3d8] sm:$0xff] }
  0x74   : > { %v488_v36 = vadd.f32 %v487_v29, %v411_v20  ;;  %v304_v20 = vld [vmem:[%s1737_s24 + $0x3c8] sm:$0xff]  ;;  %v2010_v29 = vld [vmem:[%s1737_s24 + $0x3e0] sm:$0xff] }
  0x75   : > { %v557_v39 = vadd.f32 %v556_v33, %v412_v25  ;;  %v432_v31 = vmul.f32 %v304_v20, %v304_v20  ;;  %v2013_v33 = vld [vmem:[%s1737_s24 + $0x3e8] sm:$0xff]  ;;  %v435_v43 = vmul.f32 %v2010_v29, %v2010_v29 }
  0x76   : > { %902 = vperm.xlu2 %1526, %v672_v18   ;;  %v489_v42 = vadd.f32 %v488_v36, %v413_v28  ;;  %v428_v18 = vmul.f32 %v300_v5, %v300_v5 }
  0x77   : > { %897 = vperm.xlu1 %1525, %v671_v22   ;;  %892 = vperm.xlu0 %1524, %v670_v23   ;;  %v558_v45 = vadd.f32 %v557_v39, %v414_v32  ;;  %v305_v23 = vld [vmem:[%s1737_s24 + $0x3d0] sm:$0xff] }
  0x78   : > { %v490_v49 = vadd.f32 %v489_v42, %v415_v35  ;;  %v1982_v1 = vpop.permute.xlu2 %737  ;;  %v433_v34 = vmul.f32 %v305_v23, %v305_v23  ;;  %v310_v42 = vld [vmem:[%s1737_s24 + $0x3f8] sm:$0xff] }
  0x79   : > { %v559_v54 = vadd.f32 %v558_v45, %v416_v38  ;;  %v434_v38 = vmul.f32 %v306_v26, %v306_v26  ;;  %v438_v52 = vmul.f32 %v310_v42, %v310_v42 }
  0x7a   : > { %v491_v58 = vadd.f32 %v490_v49, %v417_v41  ;;  %v681_v41 = vld [vmem:[%s2668_s1 + $0x190] sm:$0xff] }
  0x7b   : > { %v560_v61 = vadd.f32 %v559_v54, %v418_v44 }
  0x7c   : > { %v492_v0 = vadd.f32 %v491_v58, %v419_v48  ;;  %v436_v48 = vmul.f32 %v2013_v33, %v2013_v33 }
  0x7d   : > { %v561_v4 = vadd.f32 %v560_v61, %v420_v53 }
  0x7e   : > { %917 = vperm.xlu2 %1526, %v675_v46   ;;  %v493_v7 = vadd.f32 %v492_v0, %v421_v57  ;;  %v680_v46 = vld [vmem:[%s2668_s1 + $0x188] sm:$0xff] }
  0x7f   : > { %912 = vperm.xlu1 %1525, %v674_v50   ;;  %907 = vperm.xlu0 %1524, %v673_v51   ;;  %v562_v10 = vadd.f32 %v561_v4, %v422_v60  ;;  %v437_v50 = vmul.f32 %v309_v37, %v309_v37 }
  0x80   : > { %v494_v14 = vadd.f32 %v493_v7, %v423_v63  ;;  %v2015_v36 = vpop.permute.xlu2 %752  ;;  %v682_v63 = vld [vmem:[%s2668_s1 + $0x198] sm:$0xff] }
  0x81   : > { %v563_v19 = vadd.f32 %v562_v10, %v424_v3  ;;  %v2018_v40 = vpop.permute.xlu1 %707  ;;  %v2026_v45 = vpop.permute.xlu0 %697 }
  0x82   : > { %v495_v22 = vadd.f32 %v494_v14, %v425_v6  ;;  %v686_v14 = vld [vmem:[%s2668_s1 + $0x1b8] sm:$0xff] }
  0x83   : > { %v564_v25 = vadd.f32 %v563_v19, %v426_v9 }
  0x84   : > { %v496_v28 = vadd.f32 %v495_v22, %v427_v13 }
  0x85   : > { %v565_v32 = vadd.f32 %v564_v25, %v428_v18 }
  0x86   : > { %932 = vperm.xlu2 %1526, %v678_v11   ;;  %v497_v35 = vadd.f32 %v496_v28, %v429_v21  ;;  %v687_v11 = vld [vmem:[%s2668_s1 + $0x1c0] sm:$0xff] }
  0x87   : > { %927 = vperm.xlu1 %1525, %v677_v15   ;;  %922 = vperm.xlu0 %1524, %v676_v16   ;;  %v566_v39 = vadd.f32 %v565_v32, %v430_v24  ;;  %v685_v15 = vld [vmem:[%s2668_s1 + $0x1b0] sm:$0xff] }
  0x88   : > { %v498_v44 = vadd.f32 %v497_v35, %v431_v27  ;;  %v2039_v61 = vpop.permute.xlu2 %767  ;;  %v689_v32 = vld [vmem:[%s2668_s1 + $0x1d0] sm:$0xff] }
  0x89   : > { %v567_v49 = vadd.f32 %v566_v39, %v432_v31  ;;  %v2047_v2 = vpop.permute.xlu1 %712  ;;  %v2049_v4 = vpop.permute.xlu0 %702  ;;  %v690_v31 = vld [vmem:[%s2668_s1 + $0x1d8] sm:$0xff] }
  0x8a   : > { %v499_v51 = vadd.f32 %v498_v44, %v433_v34  ;;  %v688_v34 = vld [vmem:[%s2668_s1 + $0x1c8] sm:$0xff] }
  0x8b   : > { %v568_v53 = vadd.f32 %v567_v49, %v434_v38 }
  0x8c   : > { %v500_v54 = vadd.f32 %v499_v51, %v435_v43 }
  0x8d   : > { %v569_v56 = vadd.f32 %v568_v53, %v436_v48 }
  0x8e   : > { %947 = vperm.xlu2 %1526, %v681_v41   ;;  %v501_v57 = vadd.f32 %v500_v54, %v437_v50 }
  0x8f   : > { %942 = vperm.xlu1 %1525, %v680_v46   ;;  %937 = vperm.xlu0 %1524, %v679_v47   ;;  %v570_v58 = vadd.f32 %v569_v56, %v438_v52 }
  0x90   : > { %v502_v60 = vrot.slane %v501_v57, 4  ;;  %v2060_v18 = vpop.permute.xlu2 %782 }
  0x91   : > { %v571_v0 = vrot.slane %v570_v58, 4  ;;  %v2062_v20 = vpop.permute.xlu1 %732  ;;  %v2064_v21 = vpop.permute.xlu0 %727 }
  0x92   : > { %v503_v3 = vadd.f32 %v502_v60, %v501_v57  ;;  %v693_v60 = vld [vmem:[%s2668_s1 + $0x1f0] sm:$0xff] }
  0x93   : > { %v572_v5 = vadd.f32 %v571_v0, %v570_v58 }
  0x94   : > { %v504_v6 = vrot.slane %v503_v3, 2 }
  0x95   : > { %v573_v7 = vrot.slane %v572_v5, 2 }
  0x96   : > { %962 = vperm.xlu2 %1526, %v684_v59   ;;  %v505_v9 = vadd.f32 %v504_v6, %v503_v3 }
  0x97   : > { %957 = vperm.xlu1 %1525, %v683_v62   ;;  %952 = vperm.xlu0 %1524, %v682_v63   ;;  %v574_v10 = vadd.f32 %v573_v7, %v572_v5  ;;  %v692_v62 = vld [vmem:[%s2668_s1 + $0x1e8] sm:$0xff]  ;;  %v691_v63 = vld [vmem:[%s2668_s1 + $0x1e0] sm:$0xff] }
  0x98   : > { %v506_v13 = vrot.slane %v505_v9, 1  ;;  %v2066_v26 = vpop.permute.xlu2 %797 }
  0x99   : > { %v575_v16 = vrot.slane %v574_v10, 1  ;;  %v2068_v28 = vpop.permute.xlu1 %747  ;;  %v2079_v37 = vpop.permute.xlu0 %742 }
  0x9a   : > { %v507_v17 = vadd.f32 %v506_v13, %v505_v9 }
  0x9b   : > { %v576_v19 = vadd.f32 %v575_v16, %v574_v10 }
  0x9c   : > { %1527 = vrsqrt.f32 %v507_v17  ;;  %vm584_vm0 = vcmp.eq.f32.partialorder %v507_v17, inf  ;;  %v587_v44 = vand.u32 2147483648, %v507_v17  ;;  %vm586_vm1 = vcmp.eq.f32.partialorder %v507_v17, 0.0 }
  0x9d   : > { %1529 = vrsqrt.f32 %v576_v19  ;;  %vm596_vm2 = vcmp.eq.f32.partialorder %v576_v19, inf  ;;  %v599_v48 = vand.u32 2147483648, %v576_v19  ;;  %vm598_vm3 = vcmp.eq.f32.partialorder %v576_v19, 0.0 }
  0x9e   : > { %977 = vperm.xlu2 %1526, %v687_v11  }
  0x9f   : > { %972 = vperm.xlu1 %1525, %v686_v14   ;;  %967 = vperm.xlu0 %1524, %v685_v15  }
  0xa0   : > { %v2081_v50 = vpop.permute.xlu2 %812 }
  0xa1   : > { %v2083_v52 = vpop.permute.xlu1 %762  ;;  %v2085_v56 = vpop.permute.xlu0 %757 }
  0xa2   : > { %v1528_v22 = vpop.eup %1527 }
  0xa3   : > { %v1530_v23 = vpop.eup %1529  ;;  %v578_v24 = vmul.f32 %v1528_v22, %v507_v17 }
  0xa4   : > { %v590_v25 = vmul.f32 %v1530_v23, %v576_v19 }
  0xa5   : > { %v579_v27 = vmul.f32 %v1528_v22, %v578_v24 }
  0xa6   : > { %v591_v35 = vmul.f32 %v1530_v23, %v590_v25  ;;  %992 = vperm.xlu2 %1526, %v690_v31   ;;  %v694_v31 = vld [vmem:[%s2668_s1 + $0x1f8] sm:$0xff] }
  0xa7   : > { %987 = vperm.xlu1 %1525, %v689_v32   ;;  %v580_v38 = vmul.f32 0.5, %v579_v27  ;;  %982 = vperm.xlu0 %1524, %v688_v34  }
  0xa8   : > { %v592_v39 = vmul.f32 0.5, %v591_v35  ;;  %v2096_v0 = vpop.permute.xlu2 %827 }
  0xa9   : > { %v581_v41 = vsub.f32 1.5, %v580_v38  ;;  %v2098_v5 = vpop.permute.xlu1 %777  ;;  %v2100_v9 = vpop.permute.xlu0 %772 }
  0xaa   : > { %v593_v42 = vsub.f32 1.5, %v592_v39 }
  0xab   : > { %v582_v43 = vmul.f32 %v1528_v22, %v581_v41 }
  0xac   : > { %v594_v46 = vmul.f32 %v1530_v23, %v593_v42 }
  0xad   : > { %v583_v47 = vmul.f32 %v582_v43, %v507_v17 }
  0xae   : > { %v595_v49 = vmul.f32 %v594_v46, %v576_v19  ;;  %1007 = vperm.xlu2 %1526, %v693_v60  }
  0xaf   : > { %v585_v51 = vsel %vm584_vm0, %v507_v17, %v583_v47  ;;  %1002 = vperm.xlu1 %1525, %v692_v62   ;;  %997 = vperm.xlu0 %1524, %v691_v63  }
  0xb0   : > { %v588_v53 = vsel %vm586_vm1, %v587_v44, %v585_v51  ;;  %v597_v54 = vsel %vm596_vm2, %v576_v19, %v595_v49  ;;  %v2105_v34 = vpop.permute.xlu2 %842  ;;  %v1535_v51 = vld [vmem:[%s1737_s24 + $0x40] sm:$0xff] }
  0xb1   : > { %v600_v57 = vsel %vm598_vm3, %v599_v48, %v597_v54  ;;  %v601_v58 = vadd.f32 1e-10, %v588_v53  ;;  %v2109_v39 = vpop.permute.xlu1 %792  ;;  %v2119_v46 = vpop.permute.xlu0 %787  ;;  %v1536_v54 = vld [vmem:[%s1737_s24 + $0x50] sm:$0xff] }
  0xb2   : > { %v602_v59 = vadd.f32 1e-10, %v600_v57 }
  0xb3   : > { %1531 = vrcp.f32 %v601_v58  ;;  %vm608_vm4 = vweird.f32 %v601_v58  ;;  %v614_v10 = vand.u32 2147483648, %v601_v58  ;;  %v612_v14 = vand.u32 2147483647, %v601_v58 }
  0xb4   : > { %1533 = vrcp.f32 %v602_v59  ;;  %v628_v15 = vand.u32 2147483648, %v602_v59  ;;  %vm622_vm6 = vweird.f32 %v602_v59  ;;  %v626_v17 = vand.u32 2147483647, %v602_v59 }
  0xb5   : > { %v615_v22 = vor.u32 1.1754944e-38, %v614_v10  ;;  %vm613_vm9 = vcmp.eq.f32.partialorder %v612_v14, 8.507059e+37  ;;  %v1542_v14 = vld [vmem:[%s1737_s24 + $0xb8] sm:$0xff] }
  0xb6   : > { %v629_v25 = vor.u32 1.1754944e-38, %v628_v15  ;;  %vm627_vm11 = vcmp.eq.f32.partialorder %v626_v17, 8.507059e+37  ;;  %v1543_v17 = vld [vmem:[%s1737_s24 + $0x20] sm:$0xff] }
  0xb7   : > { %1012 = vperm.xlu0 %1524, %v694_v31  }
  0xb9   : > { %v1532_v3 = vpop.eup %1531 }
  0xba   : > { %v1534_v6 = vpop.eup %1533  ;;  %v604_v7 = vmul.f32 %v1532_v3, %v601_v58  ;;  %vm609_vm5 = vweird.f32 %v1532_v3 }
  0xbb   : > { %v618_v11 = vmul.f32 %v1534_v6, %v602_v59  ;;  %vm623_vm7 = vweird.f32 %v1534_v6  ;;  %vm610_vm8 = vmor %vm608_vm4, %vm609_vm5  ;;  %v1537_v59 = vld [vmem:[%s1737_s24 + $0x48] sm:$0xff] }
  0xbc   : > { %v605_v13 = vsub.f32 1.0, %v604_v7  ;;  %vm624_vm10 = vmor %vm622_vm6, %vm623_vm7 }
  0xbd   : > { %v619_v16 = vsub.f32 1.0, %v618_v11  ;;  %v1541_v11 = vld [vmem:[%s1737_s24 + $0xb0] sm:$0xff] }
  0xbe   : > { %v606_v19 = vmul.f32 %v1532_v3, %v605_v13 }
  0xbf   : > { %v620_v23 = vmul.f32 %v1534_v6, %v619_v16 }
  0xc0   : > { %v607_v24 = vadd.f32 %v1532_v3, %v606_v19 }
  0xc1   : > { %v621_v27 = vadd.f32 %v1534_v6, %v620_v23  ;;  %v1544_v23 = vld [vmem:[%s1737_s24 + $0x28] sm:$0xff] }
  0xc2   : > { %v611_v32 = vsel %vm610_vm8, %v1532_v3, %v607_v24 }
  0xc3   : > { %v2107_v35 = vsel %vm613_vm9, %v615_v22, %v611_v32  ;;  %v625_v38 = vsel %vm624_vm10, %v1534_v6, %v621_v27  ;;  %v1540_v6 = vld [vmem:[%s1737_s24 + $0x88] sm:$0xff]  ;;  %v2162_v22 = vpop.permute.xlu2 %857  ;;  %v1545_v27 = vld [vmem:[%s1737_s24] sm:$0xff] }
  0xc4   : > { %v2111_v41 = vsel %vm627_vm11, %v629_v25, %v625_v38  ;;  %v1023_v42 = vmul.f32 %v1933_v55, %v2107_v35  ;;  %v1025_v43 = vmul.f32 %v1961_v30, %v2107_v35  ;;  %v1031_v44 = vmul.f32 %v1982_v1, %v2107_v35  ;;  %v2174_v38 = vpop.permute.xlu0 %802 }
  0xc5   : > { %v1024_v47 = vmul.f32 %v1933_v55, %v2111_v41  ;;  %v1026_v48 = vmul.f32 %v1961_v30, %v2111_v41  ;;  %v1032_v49 = vmul.f32 %v1982_v1, %v2111_v41  ;;  %v1037_v58 = vmul.f32 %v2015_v36, %v2107_v35  ;;  %v1538_v55 = vld [vmem:[%s1737_s24 + $0x58] sm:$0xff]  ;;  %v1539_v1 = vld [vmem:[%s1737_s24 + $0x80] sm:$0xff] }
  0xc6   : > { %v1151_v53 = vmul.f32 %v1535_v51, %v1023_v42  ;;  %v1153_v57 = vmul.f32 %v1536_v54, %v1025_v43  ;;  %v1038_v62 = vmul.f32 %v2015_v36, %v2111_v41  ;;  %v1159_v63 = vmul.f32 %v1539_v1, %v1031_v44  ;;  %v1546_v42 = vld [vmem:[%s1737_s24 + $0x8] sm:$0xff]  ;;  %v1547_v44 = vld [vmem:[%s1737_s24 + $0xe0] sm:$0xff]  ;;  %v1549_v54 = vld [vmem:[%s1737_s24 + $0x30] sm:$0xff] }
  0xc7   : > { %v1152_v60 = vmul.f32 %v1537_v59, %v1024_v47  ;;  %v1154_v30 = vmul.f32 %v1538_v55, %v1026_v48  ;;  %v1019_v3 = vmul.f32 %v2018_v40, %v2107_v35  ;;  %v1160_v7 = vmul.f32 %v1540_v6, %v1032_v49  ;;  %v1548_v49 = vld [vmem:[%s1737_s24 + $0xe8] sm:$0xff]  ;;  %v1551_v55 = vld [vmem:[%s1737_s24 + $0x10] sm:$0xff] }
  0xc8   : > { %1279 = vst [vmem:[%s2126_s13 + $0x40] sm:$0xff] %v1151_v53  ;;  %v1020_v10 = vmul.f32 %v2018_v40, %v2111_v41  ;;  %v1165_v13 = vmul.f32 %v1541_v11, %v1037_v58  ;;  %v1015_v36 = vmul.f32 %v2026_v45, %v2107_v35  ;;  %v1166_v15 = vmul.f32 %v1542_v14, %v1038_v62  ;;  %v1550_v58 = vld [vmem:[%s1737_s24 + $0x38] sm:$0xff] }
  0xc9   : > { %1280 = vst [vmem:[%s2126_s13 + $0x48] sm:$0xff] %v1152_v60  ;;  %v1016_v16 = vmul.f32 %v2026_v45, %v2111_v41  ;;  %v1147_v19 = vmul.f32 %v1543_v17, %v1019_v3  ;;  %v1043_v40 = vmul.f32 %v2039_v61, %v2107_v35  ;;  %v1044_v25 = vmul.f32 %v2039_v61, %v2111_v41  ;;  %v2168_v45 = vpop.permute.xlu1 %807  ;;  %v1552_v62 = vld [vmem:[%s1737_s24 + $0x18] sm:$0xff]  ;;  %v1553_v3 = vld [vmem:[%s1737_s24 + $0x110] sm:$0xff] }
  0xca   : > { %1281 = vst [vmem:[%s2126_s13 + $0x50] sm:$0xff] %v1153_v57  ;;  %v1148_v24 = vmul.f32 %v1544_v23, %v1020_v10  ;;  %v1143_v31 = vmul.f32 %v1545_v27, %v1015_v36  ;;  %v1021_v32 = vmul.f32 %v2047_v2, %v2107_v35  ;;  %v1022_v61 = vmul.f32 %v2047_v2, %v2111_v41  ;;  %v1554_v10 = vld [vmem:[%s1737_s24 + $0x118] sm:$0xff]  ;;  %v1555_v36 = vld [vmem:[%s1737_s24 + $0x70] sm:$0xff] }
  0xcb   : > { %1282 = vst [vmem:[%s2126_s13 + $0x58] sm:$0xff] %v1154_v30  ;;  %v1144_v43 = vmul.f32 %v1546_v42, %v1016_v16  ;;  %v1171_v47 = vmul.f32 %v1547_v44, %v1043_v40  ;;  %v1017_v48 = vmul.f32 %v2049_v4, %v2107_v35  ;;  %v1172_v51 = vmul.f32 %v1548_v49, %v1044_v25  ;;  %v1556_v17 = vld [vmem:[%s1737_s24 + $0x78] sm:$0xff]  ;;  %v1557_v40 = vld [vmem:[%s1737_s24 + $0x60] sm:$0xff]  ;;  %v1558_v25 = vld [vmem:[%s1737_s24 + $0x68] sm:$0xff] }
  0xcc   : > { %1287 = vst [vmem:[%s2126_s13 + $0x80] sm:$0xff] %v1159_v63  ;;  %v1018_v53 = vmul.f32 %v2049_v4, %v2111_v41  ;;  %v1149_v2 = vmul.f32 %v1549_v54, %v1021_v32  ;;  %v1049_v57 = vmul.f32 %v2060_v18, %v2107_v35  ;;  %v1150_v59 = vmul.f32 %v1550_v58, %v1022_v61  ;;  %v2220_v16 = vpop.permute.xlu0 %817  ;;  %v1559_v32 = vld [vmem:[%s1737_s24 + $0x140] sm:$0xff]  ;;  %v1562_v49 = vld [vmem:[%s1737_s24 + $0xa8] sm:$0xff]  ;;  %v1563_v54 = vld [vmem:[%s1737_s24 + $0x90] sm:$0xff] }
  0xcd   : > { %1288 = vst [vmem:[%s2126_s13 + $0x88] sm:$0xff] %v1160_v7  ;;  %v1050_v60 = vmul.f32 %v2060_v18, %v2111_v41  ;;  %v1145_v30 = vmul.f32 %v1551_v55, %v1017_v48  ;;  %v1029_v4 = vmul.f32 %v2062_v20, %v2107_v35  ;;  %v1030_v63 = vmul.f32 %v2062_v20, %v2111_v41  ;;  %v2208_v7 = vpop.permute.xlu2 %872  ;;  %v1564_v58 = vld [vmem:[%s1737_s24 + $0x98] sm:$0xff]  ;;  %v1565_v55 = vld [vmem:[%s1737_s24 + $0x170] sm:$0xff] }
  0xce   : > { %1293 = vst [vmem:[%s2126_s13 + $0xb0] sm:$0xff] %v1165_v13  ;;  %v1146_v1 = vmul.f32 %v1552_v62, %v1018_v53  ;;  %v1177_v6 = vmul.f32 %v1553_v3, %v1049_v57  ;;  %v1027_v18 = vmul.f32 %v2064_v21, %v2107_v35  ;;  %v1028_v13 = vmul.f32 %v2064_v21, %v2111_v41  ;;  %v1567_v3 = vld [vmem:[%s1737_s24 + $0xd0] sm:$0xff] }
  0xcf   : > { %1294 = vst [vmem:[%s2126_s13 + $0xb8] sm:$0xff] %v1166_v15  ;;  %v1178_v11 = vmul.f32 %v1554_v10, %v1050_v60  ;;  %v1157_v14 = vmul.f32 %v1555_v36, %v1029_v4  ;;  %v1055_v15 = vmul.f32 %v2066_v26, %v2107_v35  ;;  %v1056_v21 = vmul.f32 %v2066_v26, %v2111_v41  ;;  %v1568_v10 = vld [vmem:[%s1737_s24 + $0xd8] sm:$0xff]  ;;  %v1569_v36 = vld [vmem:[%s1737_s24 + $0xc0] sm:$0xff] }
  0xd0   : > { %1275 = vst [vmem:[%s2126_s13 + $0x20] sm:$0xff] %v1147_v19  ;;  %v1158_v19 = vmul.f32 %v1556_v17, %v1030_v63  ;;  %v1155_v23 = vmul.f32 %v1557_v40, %v1027_v18  ;;  %v1156_v27 = vmul.f32 %v1558_v25, %v1028_v13  ;;  %v1033_v42 = vmul.f32 %v2079_v37, %v2107_v35 }
  0xd1   : > { %1276 = vst [vmem:[%s2126_s13 + $0x28] sm:$0xff] %v1148_v24  ;;  %v2214_v20 = vpop.permute.xlu1 %822  ;;  %v1035_v24 = vmul.f32 %v2068_v28, %v2107_v35  ;;  %v1183_v26 = vmul.f32 %v1559_v32, %v1055_v15  ;;  %v1034_v44 = vmul.f32 %v2079_v37, %v2111_v41  ;;  %v1062_v53 = vmul.f32 %v2081_v50, %v2111_v41  ;;  %v1570_v15 = vld [vmem:[%s1737_s24 + $0xc8] sm:$0xff] }
  0xd2   : > { %1271 = vst [vmem:[%s2126_s13] sm:$0xff] %v1143_v31  ;;  %v1036_v31 = vmul.f32 %v2068_v28, %v2111_v41  ;;  %v1061_v28 = vmul.f32 %v2081_v50, %v2107_v35  ;;  %v1041_v37 = vmul.f32 %v2083_v52, %v2107_v35  ;;  %v1042_v60 = vmul.f32 %v2083_v52, %v2111_v41 }
  0xd3   : > { %1272 = vst [vmem:[%s2126_s13 + $0x8] sm:$0xff] %v1144_v43  ;;  %v1560_v43 = vld [vmem:[%s1737_s24 + $0x148] sm:$0xff]  ;;  %v1039_v4 = vmul.f32 %v2085_v56, %v2107_v35  ;;  %v1040_v52 = vmul.f32 %v2085_v56, %v2111_v41  ;;  %v1067_v18 = vmul.f32 %v2096_v0, %v2107_v35  ;;  %v1068_v13 = vmul.f32 %v2096_v0, %v2111_v41 }
  0xd4   : > { %1299 = vst [vmem:[%s2126_s13 + $0xe0] sm:$0xff] %v1171_v47  ;;  %v1184_v61 = vmul.f32 %v1560_v43, %v1056_v21  ;;  %v1561_v47 = vld [vmem:[%s1737_s24 + $0xa0] sm:$0xff]  ;;  %v2266_v62 = vpop.permute.xlu0 %832  ;;  %v1045_v0 = vmul.f32 %v2100_v9, %v2107_v35  ;;  %v1046_v25 = vmul.f32 %v2100_v9, %v2111_v41  ;;  %v1073_v32 = vmul.f32 %v2105_v34, %v2107_v35 }
  0xd5   : > { %1300 = vst [vmem:[%s2126_s13 + $0xe8] sm:$0xff] %v1172_v51  ;;  %v1163_v48 = vmul.f32 %v1561_v47, %v1035_v24  ;;  %v1164_v51 = vmul.f32 %v1562_v49, %v1036_v31  ;;  %v2254_v57 = vpop.permute.xlu2 %887  ;;  %v1167_v56 = vmul.f32 %v1569_v36, %v1039_v4  ;;  %v1168_v17 = vmul.f32 %v1570_v15, %v1040_v52  ;;  %v1571_v21 = vld [vmem:[%s1737_s24 + $0x1a0] sm:$0xff] }
  0xd6   : > { %1277 = vst [vmem:[%s2126_s13 + $0x30] sm:$0xff] %v1149_v2  ;;  %v1161_v2 = vmul.f32 %v1563_v54, %v1033_v42  ;;  %v1195_v40 = vmul.f32 %v1571_v21, %v1067_v18  ;;  %v1074_v43 = vmul.f32 %v2105_v34, %v2111_v41  ;;  %v1053_v47 = vmul.f32 %v2109_v39, %v2107_v35  ;;  %v1585_v15 = vld [vmem:[%s1737_s24 + $0x160] sm:$0xff]  ;;  %v1586_v21 = vld [vmem:[%s1737_s24 + $0x168] sm:$0xff] }
  0xd7   : > { %1278 = vst [vmem:[%s2126_s13 + $0x38] sm:$0xff] %v1150_v59  ;;  %v1162_v59 = vmul.f32 %v1564_v58, %v1034_v44  ;;  %v1054_v34 = vmul.f32 %v2109_v39, %v2111_v41  ;;  %v1051_v54 = vmul.f32 %v2119_v46, %v2107_v35  ;;  %v1052_v58 = vmul.f32 %v2119_v46, %v2111_v41  ;;  %v1581_v46 = vld [vmem:[%s1737_s24 + $0x120] sm:$0xff] }
  0xd8   : > { %1273 = vst [vmem:[%s2126_s13 + $0x10] sm:$0xff] %v1145_v30  ;;  %v1189_v30 = vmul.f32 %v1565_v55, %v1061_v28  ;;  %v1576_v28 = vld [vmem:[%s1737_s24 + $0xf8] sm:$0xff]  ;;  %v1079_v39 = vmul.f32 %v2162_v22, %v2107_v35  ;;  %v1080_v4 = vmul.f32 %v2162_v22, %v2111_v41  ;;  %v1059_v52 = vmul.f32 %v2168_v45, %v2107_v35 }
  0xd9   : > { %1274 = vst [vmem:[%s2126_s13 + $0x18] sm:$0xff] %v1146_v1  ;;  %v2260_v50 = vpop.permute.xlu1 %837  ;;  %v1566_v1 = vld [vmem:[%s1737_s24 + $0x178] sm:$0xff]  ;;  %v1174_v49 = vmul.f32 %v1576_v28, %v1046_v25  ;;  %v1060_v18 = vmul.f32 %v2168_v45, %v2111_v41  ;;  %v1058_v45 = vmul.f32 %v2174_v38, %v2111_v41 }
  0xda   : > { %1305 = vst [vmem:[%s2126_s13 + $0x110] sm:$0xff] %v1177_v6  ;;  %v1190_v63 = vmul.f32 %v1566_v1, %v1062_v53  ;;  %v1169_v6 = vmul.f32 %v1567_v3, %v1041_v37  ;;  %v1580_v55 = vld [vmem:[%s1737_s24 + $0x138] sm:$0xff]  ;;  %v1582_v3 = vld [vmem:[%s1737_s24 + $0x128] sm:$0xff] }
  0xdb   : > { %1306 = vst [vmem:[%s2126_s13 + $0x118] sm:$0xff] %v1178_v11  ;;  %v1170_v11 = vmul.f32 %v1568_v10, %v1042_v60  ;;  %v1583_v10 = vld [vmem:[%s1737_s24 + $0x200] sm:$0xff]  ;;  %v1588_v25 = vld [vmem:[%s1737_s24 + $0x158] sm:$0xff] }
  0xdc   : > { %1285 = vst [vmem:[%s2126_s13 + $0x70] sm:$0xff] %v1157_v14  ;;  %v1047_v14 = vmul.f32 %v2098_v5, %v2107_v35 }
  0xdd   : > { %1286 = vst [vmem:[%s2126_s13 + $0x78] sm:$0xff] %v1158_v19  ;;  %v1048_v19 = vmul.f32 %v2098_v5, %v2111_v41  ;;  %v1573_v5 = vld [vmem:[%s1737_s24 + $0x100] sm:$0xff] }
  0xde   : > { %1283 = vst [vmem:[%s2126_s13 + $0x60] sm:$0xff] %v1155_v23  ;;  %v1572_v23 = vld [vmem:[%s1737_s24 + $0x1a8] sm:$0xff]  ;;  %v1175_v31 = vmul.f32 %v1573_v5, %v1047_v14  ;;  %v1186_v5 = vmul.f32 %v1588_v25, %v1058_v45  ;;  %v1600_v45 = vld [vmem:[%s1737_s24 + $0x1b8] sm:$0xff] }
  0xdf   : > { %1284 = vst [vmem:[%s2126_s13 + $0x68] sm:$0xff] %v1156_v27  ;;  %v1196_v24 = vmul.f32 %v1572_v23, %v1068_v13  ;;  %v2296_v27 = vpop.permute.xlu2 %902  ;;  %v1057_v13 = vmul.f32 %v2174_v38, %v2107_v35  ;;  %v1587_v23 = vld [vmem:[%s1737_s24 + $0x150] sm:$0xff]  ;;  %v1065_v38 = vmul.f32 %v2214_v20, %v2107_v35  ;;  %v1604_v25 = vld [vmem:[%s1737_s24 + $0x1f8] sm:$0xff] }
  0xe0   : > { %1311 = vst [vmem:[%s2126_s13 + $0x140] sm:$0xff] %v1183_v26  ;;  %v1574_v26 = vld [vmem:[%s1737_s24 + $0x108] sm:$0xff] }
  0xe1   : > { %1312 = vst [vmem:[%s2126_s13 + $0x148] sm:$0xff] %v1184_v61  ;;  %v1176_v42 = vmul.f32 %v1574_v26, %v1048_v19  ;;  %v2306_v9 = vpop.permute.xlu1 %852  ;;  %v1575_v61 = vld [vmem:[%s1737_s24 + $0xf0] sm:$0xff]  ;;  %v1085_v19 = vmul.f32 %v2208_v7, %v2107_v35 }
  0xe2   : > { %1291 = vst [vmem:[%s2126_s13 + $0xa0] sm:$0xff] %v1163_v48  ;;  %v1173_v44 = vmul.f32 %v1575_v61, %v1045_v0  ;;  %v2312_v48 = vpop.permute.xlu0 %847  ;;  %v1086_v0 = vmul.f32 %v2208_v7, %v2111_v41  ;;  %v1589_v7 = vld [vmem:[%s1737_s24 + $0x230] sm:$0xff] }
  0xe3   : > { %1292 = vst [vmem:[%s2126_s13 + $0xa8] sm:$0xff] %v1164_v51  ;;  %v1577_v51 = vld [vmem:[%s1737_s24 + $0x1d0] sm:$0xff]  ;;  %v1213_v26 = vmul.f32 %v1589_v7, %v1085_v19  ;;  %v1605_v7 = vld [vmem:[%s1737_s24 + $0x1e0] sm:$0xff] }
  0xe4   : > { %1289 = vst [vmem:[%s2126_s13 + $0x90] sm:$0xff] %v1161_v2  ;;  %v1201_v53 = vmul.f32 %v1577_v51, %v1073_v32  ;;  %v1578_v2 = vld [vmem:[%s1737_s24 + $0x1d8] sm:$0xff] }
  0xe5   : > { %1290 = vst [vmem:[%s2126_s13 + $0x98] sm:$0xff] %v1162_v59  ;;  %v1202_v37 = vmul.f32 %v1578_v2, %v1074_v43  ;;  %v1579_v59 = vld [vmem:[%s1737_s24 + $0x130] sm:$0xff]  ;;  %v1590_v43 = vld [vmem:[%s1737_s24 + $0x238] sm:$0xff] }
  0xe6   : > { %1317 = vst [vmem:[%s2126_s13 + $0x170] sm:$0xff] %v1189_v30  ;;  %v1181_v60 = vmul.f32 %v1579_v59, %v1053_v47  ;;  %v1182_v30 = vmul.f32 %v1580_v55, %v1054_v34  ;;  %v1214_v61 = vmul.f32 %v1590_v43, %v1086_v0  ;;  %v1591_v47 = vld [vmem:[%s1737_s24 + $0x190] sm:$0xff]  ;;  %v1592_v51 = vld [vmem:[%s1737_s24 + $0x198] sm:$0xff] }
  0xe7   : > { %1318 = vst [vmem:[%s2126_s13 + $0x178] sm:$0xff] %v1190_v63  ;;  %v2334_v1 = vpop.permute.xlu2 %917  ;;  %v1179_v63 = vmul.f32 %v1581_v46, %v1051_v54  ;;  %v1193_v28 = vmul.f32 %v1591_v47, %v1065_v38  ;;  %v1593_v54 = vld [vmem:[%s1737_s24 + $0x180] sm:$0xff]  ;;  %v1070_v46 = vmul.f32 %v2266_v62, %v2111_v41 }
  0xe8   : > { %1297 = vst [vmem:[%s2126_s13 + $0xd0] sm:$0xff] %v1169_v6  ;;  %v1180_v6 = vmul.f32 %v1582_v3, %v1052_v58  ;;  %v1594_v58 = vld [vmem:[%s1737_s24 + $0x188] sm:$0xff]  ;;  %v1097_v3 = vmul.f32 %v2296_v27, %v2107_v35  ;;  %v1607_v47 = vld [vmem:[%s1737_s24 + $0x2c0] sm:$0xff] }
  0xe9   : > { %1298 = vst [vmem:[%s2126_s13 + $0xd8] sm:$0xff] %v1170_v11  ;;  %v2344_v22 = vpop.permute.xlu1 %867  ;;  %v1207_v11 = vmul.f32 %v1583_v10, %v1079_v39  ;;  %v1595_v39 = vld [vmem:[%s1737_s24 + $0x260] sm:$0xff]  ;;  %v1098_v10 = vmul.f32 %v2296_v27, %v2111_v41  ;;  %v1078_v27 = vmul.f32 %v2306_v9, %v2111_v41 }
  0xea   : > { %1295 = vst [vmem:[%s2126_s13 + $0xc0] sm:$0xff] %v1167_v56  ;;  %v2350_v36 = vpop.permute.xlu0 %862  ;;  %v1584_v56 = vld [vmem:[%s1737_s24 + $0x208] sm:$0xff] }
  0xeb   : > { %1296 = vst [vmem:[%s2126_s13 + $0xc8] sm:$0xff] %v1168_v17  ;;  %v1208_v14 = vmul.f32 %v1584_v56, %v1080_v4  ;;  %v1187_v17 = vmul.f32 %v1585_v15, %v1059_v52  ;;  %v1077_v56 = vmul.f32 %v2306_v9, %v2107_v35  ;;  %v1198_v15 = vmul.f32 %v1600_v45, %v1070_v46  ;;  %v1613_v46 = vld [vmem:[%s1737_s24 + $0x2f0] sm:$0xff] }
  0xec   : > { %1323 = vst [vmem:[%s2126_s13 + $0x1a0] sm:$0xff] %v1195_v40  ;;  %v1188_v40 = vmul.f32 %v1586_v21, %v1060_v18  ;;  %v1075_v21 = vmul.f32 %v2312_v48, %v2107_v35  ;;  %v1103_v9 = vmul.f32 %v2334_v1, %v2107_v35 }
  0xed   : > { %1324 = vst [vmem:[%s2126_s13 + $0x1a8] sm:$0xff] %v1196_v24  ;;  %v1185_v24 = vmul.f32 %v1587_v23, %v1057_v13  ;;  %v1076_v23 = vmul.f32 %v2312_v48, %v2111_v41  ;;  %v1083_v48 = vmul.f32 %v2344_v22, %v2107_v35 }
  0xee   : > { %1303 = vst [vmem:[%s2126_s13 + $0x100] sm:$0xff] %v1175_v31  ;;  %v1066_v31 = vmul.f32 %v2214_v20, %v2111_v41 }
  0xef   : > { %1304 = vst [vmem:[%s2126_s13 + $0x108] sm:$0xff] %v1176_v42  ;;  %v2372_v32 = vpop.permute.xlu2 %932  ;;  %v1063_v42 = vmul.f32 %v2220_v16, %v2107_v35 }
  0xf0   : > { %1301 = vst [vmem:[%s2126_s13 + $0xf0] sm:$0xff] %v1173_v44  ;;  %v1064_v44 = vmul.f32 %v2220_v16, %v2111_v41  ;;  %v1092_v16 = vmul.f32 %v2254_v57, %v2111_v41 }
  0xf1   : > { %1302 = vst [vmem:[%s2126_s13 + $0xf8] sm:$0xff] %v1174_v49  ;;  %v2382_v20 = vpop.permute.xlu1 %882  ;;  %v1091_v49 = vmul.f32 %v2254_v57, %v2107_v35  ;;  %v1191_v2 = vmul.f32 %v1593_v54, %v1063_v42  ;;  %v1069_v57 = vmul.f32 %v2266_v62, %v2107_v35  ;;  %v1606_v42 = vld [vmem:[%s1737_s24 + $0x1e8] sm:$0xff]  ;;  %v1609_v54 = vld [vmem:[%s1737_s24 + $0x220] sm:$0xff] }
  0xf2   : > { %1329 = vst [vmem:[%s2126_s13 + $0x1d0] sm:$0xff] %v1201_v53  ;;  %v2388_v34 = vpop.permute.xlu0 %877  ;;  %v1194_v53 = vmul.f32 %v1592_v51, %v1066_v31  ;;  %v1192_v59 = vmul.f32 %v1594_v58, %v1064_v44  ;;  %v1104_v31 = vmul.f32 %v2334_v1, %v2111_v41  ;;  %v1204_v43 = vmul.f32 %v1606_v42, %v1076_v23  ;;  %v1610_v58 = vld [vmem:[%s1737_s24 + $0x228] sm:$0xff]  ;;  %v1619_v23 = vld [vmem:[%s1737_s24 + $0x320] sm:$0xff] }
  0xf3   : > { %1330 = vst [vmem:[%s2126_s13 + $0x1d8] sm:$0xff] %v1202_v37  ;;  %v1071_v37 = vmul.f32 %v2260_v50, %v2107_v35  ;;  %v1219_v55 = vmul.f32 %v1595_v39, %v1091_v49  ;;  %v1081_v49 = vmul.f32 %v2350_v36, %v2107_v35  ;;  %v1611_v39 = vld [vmem:[%s1737_s24 + $0x210] sm:$0xff] }
  0xf4   : > { %1309 = vst [vmem:[%s2126_s13 + $0x130] sm:$0xff] %v1181_v60  ;;  %v1072_v60 = vmul.f32 %v2260_v50, %v2111_v41  ;;  %v1597_v50 = vld [vmem:[%s1737_s24 + $0x1c0] sm:$0xff] }
  0xf5   : > { %1310 = vst [vmem:[%s2126_s13 + $0x138] sm:$0xff] %v1182_v30  ;;  %v1596_v30 = vld [vmem:[%s1737_s24 + $0x268] sm:$0xff]  ;;  %v1199_v52 = vmul.f32 %v1597_v50, %v1071_v37  ;;  %v1109_v37 = vmul.f32 %v2372_v32, %v2107_v35 }
  0xf6   : > { %1307 = vst [vmem:[%s2126_s13 + $0x120] sm:$0xff] %v1179_v63  ;;  %v1220_v4 = vmul.f32 %v1596_v30, %v1092_v16  ;;  %v1082_v16 = vmul.f32 %v2350_v36, %v2111_v41  ;;  %v1209_v36 = vmul.f32 %v1611_v39, %v1081_v49  ;;  %v1628_v39 = vld [vmem:[%s1737_s24 + $0x2b8] sm:$0xff] }
  0xf7   : > { %1308 = vst [vmem:[%s2126_s13 + $0x128] sm:$0xff] %v1180_v6  ;;  %v2410_v63 = vpop.permute.xlu2 %947  ;;  %v1598_v6 = vld [vmem:[%s1737_s24 + $0x1c8] sm:$0xff]  ;;  %v1237_v50 = vmul.f32 %v1613_v46, %v1109_v37 }
  0xf8   : > { %1335 = vst [vmem:[%s2126_s13 + $0x200] sm:$0xff] %v1207_v11  ;;  %v1200_v18 = vmul.f32 %v1598_v6, %v1072_v60  ;;  %v1599_v11 = vld [vmem:[%s1737_s24 + $0x1b0] sm:$0xff]  ;;  %v1110_v60 = vmul.f32 %v2372_v32, %v2111_v41  ;;  %v1087_v32 = vmul.f32 %v2388_v34, %v2107_v35  ;;  %v1088_v6 = vmul.f32 %v2388_v34, %v2111_v41 }
  0xf9   : > { %1336 = vst [vmem:[%s2126_s13 + $0x208] sm:$0xff] %v1208_v14  ;;  %v2420_v62 = vpop.permute.xlu1 %897  ;;  %v1197_v13 = vmul.f32 %v1599_v11, %v1069_v57  ;;  %v1612_v57 = vld [vmem:[%s1737_s24 + $0x218] sm:$0xff]  ;;  %v1115_v11 = vmul.f32 %v2410_v63, %v2107_v35  ;;  %v1116_v34 = vmul.f32 %v2410_v63, %v2111_v41 }
  0xfa   : > { %1315 = vst [vmem:[%s2126_s13 + $0x160] sm:$0xff] %v1187_v17  ;;  %v2426_v14 = vpop.permute.xlu0 %892  ;;  %v1601_v17 = vld [vmem:[%s1737_s24 + $0x290] sm:$0xff]  ;;  %v1210_v30 = vmul.f32 %v1612_v57, %v1082_v16  ;;  %v1629_v57 = vld [vmem:[%s1737_s24 + $0x2a0] sm:$0xff] }
  0xfb   : > { %1316 = vst [vmem:[%s2126_s13 + $0x168] sm:$0xff] %v1188_v40  ;;  %v1225_v19 = vmul.f32 %v1601_v17, %v1097_v3  ;;  %v1602_v40 = vld [vmem:[%s1737_s24 + $0x298] sm:$0xff]  ;;  %v1243_v63 = vmul.f32 %v1619_v23, %v1115_v11 }
  0xfc   : > { %1313 = vst [vmem:[%s2126_s13 + $0x150] sm:$0xff] %v1185_v24  ;;  %v1226_v0 = vmul.f32 %v1602_v40, %v1098_v10  ;;  %v1603_v24 = vld [vmem:[%s1737_s24 + $0x1f0] sm:$0xff] }
  0xfd   : > { %1314 = vst [vmem:[%s2126_s13 + $0x158] sm:$0xff] %v1186_v5  ;;  %v1205_v38 = vmul.f32 %v1603_v24, %v1077_v56  ;;  %v1206_v5 = vmul.f32 %v1604_v25, %v1078_v27  ;;  %v1616_v56 = vld [vmem:[%s1737_s24 + $0x258] sm:$0xff]  ;;  %v1617_v27 = vld [vmem:[%s1737_s24 + $0x240] sm:$0xff]  ;;  %v1093_v24 = vmul.f32 %v2426_v14, %v2107_v35  ;;  %v1094_v25 = vmul.f32 %v2426_v14, %v2111_v41  ;;  %v1623_v14 = vld [vmem:[%s1737_s24 + $0x270] sm:$0xff] }
  0xfe   : > { %1341 = vst [vmem:[%s2126_s13 + $0x230] sm:$0xff] %v1213_v26  ;;  %v1203_v26 = vmul.f32 %v1605_v7, %v1075_v21  ;;  %v1215_v17 = vmul.f32 %v1617_v27, %v1087_v32  ;;  %v1618_v21 = vld [vmem:[%s1737_s24 + $0x248] sm:$0xff] }
  0xff   : > { %1342 = vst [vmem:[%s2126_s13 + $0x238] sm:$0xff] %v1214_v61  ;;  %v1084_v61 = vmul.f32 %v2344_v22, %v2111_v41  ;;  %v2456_v44 = vpop.permute.xlu2 %962  ;;  %v1216_v40 = vmul.f32 %v1618_v21, %v1088_v6  ;;  %v1622_v7 = vld [vmem:[%s1737_s24 + $0x288] sm:$0xff] }
 0x100   : > { %1321 = vst [vmem:[%s2126_s13 + $0x190] sm:$0xff] %v1193_v28  ;;  %v1231_v28 = vmul.f32 %v1607_v47, %v1103_v9 }
 0x101   : > { %1322 = vst [vmem:[%s2126_s13 + $0x198] sm:$0xff] %v1194_v53  ;;  %v2458_v1 = vpop.permute.xlu1 %912  ;;  %v1608_v53 = vld [vmem:[%s1737_s24 + $0x2c8] sm:$0xff] }
 0x102   : > { %1319 = vst [vmem:[%s2126_s13 + $0x180] sm:$0xff] %v1191_v2  ;;  %v2464_v51 = vpop.permute.xlu0 %907  ;;  %v1232_v22 = vmul.f32 %v1608_v53, %v1104_v31  ;;  %v1211_v2 = vmul.f32 %v1609_v54, %v1083_v48  ;;  %v1122_v48 = vmul.f32 %v2456_v44, %v2111_v41  ;;  %v1102_v53 = vmul.f32 %v2458_v1, %v2111_v41  ;;  %v1626_v54 = vld [vmem:[%s1737_s24 + $0x358] sm:$0xff] }
 0x103   : > { %1320 = vst [vmem:[%s2126_s13 + $0x188] sm:$0xff] %v1192_v59  ;;  %v1212_v59 = vmul.f32 %v1610_v58, %v1084_v61  ;;  %v1101_v61 = vmul.f32 %v2458_v1, %v2107_v35  ;;  %v1099_v16 = vmul.f32 %v2464_v51, %v2107_v35  ;;  %v1100_v37 = vmul.f32 %v2464_v51, %v2111_v41 }
 0x104   : > { %1347 = vst [vmem:[%s2126_s13 + $0x260] sm:$0xff] %v1219_v55  ;;  %v1089_v55 = vmul.f32 %v2382_v20, %v2107_v35 }
 0x105   : > { %1348 = vst [vmem:[%s2126_s13 + $0x268] sm:$0xff] %v1220_v4  ;;  %v1090_v4 = vmul.f32 %v2382_v20, %v2111_v41  ;;  %v1615_v20 = vld [vmem:[%s1737_s24 + $0x250] sm:$0xff] }
 0x106   : > { %1327 = vst [vmem:[%s2126_s13 + $0x1c0] sm:$0xff] %v1199_v52  ;;  %v1614_v52 = vld [vmem:[%s1737_s24 + $0x2f8] sm:$0xff]  ;;  %v1217_v10 = vmul.f32 %v1615_v20, %v1089_v55 }
 0x107   : > { %1328 = vst [vmem:[%s2126_s13 + $0x1c8] sm:$0xff] %v1200_v18  ;;  %v1238_v3 = vmul.f32 %v1614_v52, %v1110_v60  ;;  %v1218_v45 = vmul.f32 %v1616_v56, %v1090_v4  ;;  %v1630_v4 = vld [vmem:[%s1737_s24 + $0x2a8] sm:$0xff]  ;;  %v1631_v52 = vld [vmem:[%s1737_s24 + $0x380] sm:$0xff] }
 0x108   : > { %1325 = vst [vmem:[%s2126_s13 + $0x1b0] sm:$0xff] %v1197_v13  ;;  %v1228_v46 = vmul.f32 %v1630_v4, %v1100_v37  ;;  %v1642_v37 = vld [vmem:[%s1737_s24 + $0x348] sm:$0xff] }
 0x109   : > { %1326 = vst [vmem:[%s2126_s13 + $0x1b8] sm:$0xff] %v1198_v15  ;;  %v2494_v18 = vpop.permute.xlu1 %927  ;;  %v978_v15 = vpop.permute.xlu2 %977 }
 0x10a   : > { %1353 = vst [vmem:[%s2126_s13 + $0x290] sm:$0xff] %v1225_v19  ;;  %v2500_v13 = vpop.permute.xlu0 %922  ;;  %v1095_v19 = vmul.f32 %v2420_v62, %v2107_v35  ;;  %v1127_v60 = vmul.f32 %v978_v15, %v2107_v35  ;;  %v1128_v55 = vmul.f32 %v978_v15, %v2111_v41  ;;  %v1107_v51 = vmul.f32 %v2494_v18, %v2107_v35  ;;  %v1634_v15 = vld [vmem:[%s1737_s24 + $0x2e8] sm:$0xff] }
 0x10b   : > { %1354 = vst [vmem:[%s2126_s13 + $0x298] sm:$0xff] %v1226_v0  ;;  %v1096_v0 = vmul.f32 %v2420_v62, %v2111_v41  ;;  %v1121_v62 = vmul.f32 %v2456_v44, %v2107_v35  ;;  %v1625_v44 = vld [vmem:[%s1737_s24 + $0x350] sm:$0xff]  ;;  %v1105_v6 = vmul.f32 %v2500_v13, %v2107_v35  ;;  %v1106_v56 = vmul.f32 %v2500_v13, %v2111_v41  ;;  %v1636_v13 = vld [vmem:[%s1737_s24 + $0x2d8] sm:$0xff] }
 0x10c   : > { %1333 = vst [vmem:[%s2126_s13 + $0x1f0] sm:$0xff] %v1205_v38  ;;  %v1620_v38 = vld [vmem:[%s1737_s24 + $0x328] sm:$0xff] }
 0x10d   : > { %1334 = vst [vmem:[%s2126_s13 + $0x1f8] sm:$0xff] %v1206_v5  ;;  %v1244_v9 = vmul.f32 %v1620_v38, %v1116_v34  ;;  %v1621_v5 = vld [vmem:[%s1737_s24 + $0x280] sm:$0xff] }
 0x10e   : > { %1331 = vst [vmem:[%s2126_s13 + $0x1e0] sm:$0xff] %v1203_v26  ;;  %v1223_v31 = vmul.f32 %v1621_v5, %v1095_v19  ;;  %v1224_v26 = vmul.f32 %v1622_v7, %v1096_v0  ;;  %v1635_v19 = vld [vmem:[%s1737_s24 + $0x2d0] sm:$0xff]  ;;  %v1234_v0 = vmul.f32 %v1636_v13, %v1106_v56  ;;  %v1649_v56 = vld [vmem:[%s1737_s24 + $0x3a0] sm:$0xff]  ;;  %v1652_v13 = vld [vmem:[%s1737_s24 + $0x398] sm:$0xff] }
 0x10f   : > { %1332 = vst [vmem:[%s2126_s13 + $0x1e8] sm:$0xff] %v1204_v43  ;;  %v1221_v43 = vmul.f32 %v1623_v14, %v1093_v24  ;;  %v1233_v21 = vmul.f32 %v1635_v19, %v1105_v6 }
 0x110   : > { %1359 = vst [vmem:[%s2126_s13 + $0x2c0] sm:$0xff] %v1231_v28  ;;  %v1624_v28 = vld [vmem:[%s1737_s24 + $0x278] sm:$0xff] }
 0x111   : > { %1360 = vst [vmem:[%s2126_s13 + $0x2c8] sm:$0xff] %v1232_v22  ;;  %v943_v42 = vpop.permute.xlu1 %942  ;;  %v1222_v49 = vmul.f32 %v1624_v28, %v1094_v25  ;;  %v1249_v22 = vmul.f32 %v1625_v44, %v1121_v62  ;;  %v993_v58 = vpop.permute.xlu2 %992 }
 0x112   : > { %1339 = vst [vmem:[%s2126_s13 + $0x220] sm:$0xff] %v1211_v2  ;;  %v938_v47 = vpop.permute.xlu0 %937  ;;  %v1250_v2 = vmul.f32 %v1626_v54, %v1122_v48  ;;  %v1133_v34 = vmul.f32 %v993_v58, %v2107_v35  ;;  %v1114_v23 = vmul.f32 %v943_v42, %v2111_v41 }
 0x113   : > { %1340 = vst [vmem:[%s2126_s13 + $0x228] sm:$0xff] %v1212_v59  ;;  %v1627_v59 = vld [vmem:[%s1737_s24 + $0x2b0] sm:$0xff]  ;;  %v1111_v38 = vmul.f32 %v938_v47, %v2107_v35  ;;  %v1112_v25 = vmul.f32 %v938_v47, %v2111_v41 }
 0x114   : > { %1337 = vst [vmem:[%s2126_s13 + $0x210] sm:$0xff] %v1209_v36  ;;  %v1229_v1 = vmul.f32 %v1627_v59, %v1101_v61  ;;  %v1230_v36 = vmul.f32 %v1628_v39, %v1102_v53  ;;  %v1261_v24 = vmul.f32 %v1133_v34, %v1987_v8  ;;  %v1638_v8 = vld [vmem:[%s1737_s24 + $0x318] sm:$0xff]  ;;  %v1640_v61 = vld [vmem:[%s1737_s24 + $0x308] sm:$0xff] }
 0x115   : > { %1338 = vst [vmem:[%s2126_s13 + $0x218] sm:$0xff] %v1210_v30  ;;  %v1227_v30 = vmul.f32 %v1629_v57, %v1099_v16  ;;  %v1242_v48 = vmul.f32 %v1638_v8, %v1114_v23  ;;  %v1240_v47 = vmul.f32 %v1640_v61, %v1112_v25  ;;  %v1641_v16 = vld [vmem:[%s1737_s24 + $0x340] sm:$0xff] }
 0x116   : > { %1365 = vst [vmem:[%s2126_s13 + $0x2f0] sm:$0xff] %v1237_v50  ;;  %v1108_v50 = vmul.f32 %v2494_v18, %v2111_v41  ;;  %v1633_v18 = vld [vmem:[%s1737_s24 + $0x2e0] sm:$0xff] }
 0x117   : > { %1366 = vst [vmem:[%s2126_s13 + $0x2f8] sm:$0xff] %v1238_v3  ;;  %v1255_v3 = vmul.f32 %v1631_v52, %v1127_v60  ;;  %v1647_v52 = vld [vmem:[%s1737_s24 + $0x360] sm:$0xff] }
 0x118   : > { %1345 = vst [vmem:[%s2126_s13 + $0x250] sm:$0xff] %v1217_v10  ;;  %v1632_v10 = vld [vmem:[%s1737_s24 + $0x388] sm:$0xff]  ;;  %v1236_v27 = vmul.f32 %v1634_v15, %v1108_v50 }
 0x119   : > { %1346 = vst [vmem:[%s2126_s13 + $0x258] sm:$0xff] %v1218_v45  ;;  %v958_v32 = vpop.permute.xlu1 %957  ;;  %v1256_v11 = vmul.f32 %v1632_v10, %v1128_v55  ;;  %v1235_v45 = vmul.f32 %v1633_v18, %v1107_v51 }
 0x11a   : > { %1343 = vst [vmem:[%s2126_s13 + $0x240] sm:$0xff] %v1215_v17  ;;  %v953_v20 = vpop.permute.xlu0 %952  ;;  %v1134_v17 = vmul.f32 %v993_v58, %v2111_v41  ;;  %v1120_v28 = vmul.f32 %v958_v32, %v2111_v41 }
 0x11b   : > { %1344 = vst [vmem:[%s2126_s13 + $0x248] sm:$0xff] %v1216_v40  ;;  %v1113_v40 = vmul.f32 %v943_v42, %v2107_v35  ;;  %v1117_v53 = vmul.f32 %v953_v20, %v2107_v35 }
 0x11c   : > { %1371 = vst [vmem:[%s2126_s13 + $0x320] sm:$0xff] %v1243_v63  ;;  %v1008_v63 = vpop.permute.xlu2 %1007  ;;  %v1248_v58 = vmul.f32 %v1642_v37, %v1120_v28 }
 0x11d   : > { %1372 = vst [vmem:[%s2126_s13 + $0x328] sm:$0xff] %v1244_v9  ;;  %v1262_v9 = vmul.f32 %v1134_v17, %v1993_v12  ;;  %v1139_v7 = vmul.f32 %v1008_v63, %v2107_v35  ;;  %v1140_v42 = vmul.f32 %v1008_v63, %v2111_v41  ;;  %v1639_v12 = vld [vmem:[%s1737_s24 + $0x300] sm:$0xff] }
 0x11e   : > { %1351 = vst [vmem:[%s2126_s13 + $0x280] sm:$0xff] %v1223_v31  ;;  %v1637_v31 = vld [vmem:[%s1737_s24 + $0x310] sm:$0xff]  ;;  %v1239_v14 = vmul.f32 %v1639_v12, %v1111_v38 }
 0x11f   : > { %1352 = vst [vmem:[%s2126_s13 + $0x288] sm:$0xff] %v1224_v26  ;;  %v1241_v62 = vmul.f32 %v1637_v31, %v1113_v40  ;;  %v1268_v44 = vmul.f32 %v1140_v42, %v2013_v33  ;;  %v1643_v33 = vld [vmem:[%s1737_s24 + $0x330] sm:$0xff] }
 0x120   : > { %1349 = vst [vmem:[%s2126_s13 + $0x270] sm:$0xff] %v1221_v43  ;;  %v1119_v43 = vmul.f32 %v958_v32, %v2107_v35  ;;  %v1657_v42 = vld [vmem:[%s1737_s24 + $0x3f0] sm:$0xff] }
 0x121   : > { %1350 = vst [vmem:[%s2126_s13 + $0x278] sm:$0xff] %v1222_v49  ;;  %v973_v5 = vpop.permute.xlu1 %972  ;;  %v1267_v49 = vmul.f32 %v1139_v7, %v2010_v29 }
 0x122   : > { %1377 = vst [vmem:[%s2126_s13 + $0x350] sm:$0xff] %v1249_v22  ;;  %v968_v26 = vpop.permute.xlu0 %967  ;;  %v1118_v22 = vmul.f32 %v953_v20, %v2111_v41  ;;  %v1247_v54 = vmul.f32 %v1641_v16, %v1119_v43  ;;  %v1126_v29 = vmul.f32 %v973_v5, %v2111_v41  ;;  %v1648_v20 = vld [vmem:[%s1737_s24 + $0x368] sm:$0xff] }
 0x123   : > { %1378 = vst [vmem:[%s2126_s13 + $0x358] sm:$0xff] %v1250_v2  ;;  %v1125_v2 = vmul.f32 %v973_v5, %v2107_v35  ;;  %v1123_v60 = vmul.f32 %v968_v26, %v2107_v35  ;;  %v1124_v57 = vmul.f32 %v968_v26, %v2111_v41  ;;  %v1655_v5 = vld [vmem:[%s1737_s24 + $0x3c0] sm:$0xff] }
 0x124   : > { %1357 = vst [vmem:[%s2126_s13 + $0x2b0] sm:$0xff] %v1229_v1  ;;  %v1245_v1 = vmul.f32 %v1643_v33, %v1117_v53 }
 0x125   : > { %1358 = vst [vmem:[%s2126_s13 + $0x2b8] sm:$0xff] %v1230_v36  ;;  %v1644_v36 = vld [vmem:[%s1737_s24 + $0x338] sm:$0xff]  ;;  %v1252_v10 = vmul.f32 %v1648_v20, %v1124_v57 }
 0x126   : > { %1355 = vst [vmem:[%s2126_s13 + $0x2a0] sm:$0xff] %v1227_v30  ;;  %v1246_v55 = vmul.f32 %v1644_v36, %v1118_v22  ;;  %v1645_v30 = vld [vmem:[%s1737_s24 + $0x370] sm:$0xff] }
 0x127   : > { %1356 = vst [vmem:[%s2126_s13 + $0x2a8] sm:$0xff] %v1228_v46  ;;  %v1253_v51 = vmul.f32 %v1645_v30, %v1125_v2  ;;  %v1646_v46 = vld [vmem:[%s1737_s24 + $0x378] sm:$0xff] }
 0x128   : > { %1383 = vst [vmem:[%s2126_s13 + $0x380] sm:$0xff] %v1255_v3  ;;  %v1254_v50 = vmul.f32 %v1646_v46, %v1126_v29  ;;  %v1251_v3 = vmul.f32 %v1647_v52, %v1123_v60 }
 0x129   : > { %1384 = vst [vmem:[%s2126_s13 + $0x388] sm:$0xff] %v1256_v11  ;;  %v988_v59 = vpop.permute.xlu1 %987 }
 0x12a   : > { %1363 = vst [vmem:[%s2126_s13 + $0x2e0] sm:$0xff] %v1235_v45  ;;  %v983_v39 = vpop.permute.xlu0 %982  ;;  %v1131_v4 = vmul.f32 %v988_v59, %v2107_v35  ;;  %v1132_v32 = vmul.f32 %v988_v59, %v2111_v41  ;;  %v1650_v45 = vld [vmem:[%s1737_s24 + $0x3a8] sm:$0xff] }
 0x12b   : > { %1364 = vst [vmem:[%s2126_s13 + $0x2e8] sm:$0xff] %v1236_v27  ;;  %v1129_v6 = vmul.f32 %v983_v39, %v2107_v35  ;;  %v1130_v11 = vmul.f32 %v983_v39, %v2111_v41  ;;  %v1651_v27 = vld [vmem:[%s1737_s24 + $0x390] sm:$0xff] }
 0x12c   : > { %1361 = vst [vmem:[%s2126_s13 + $0x2d0] sm:$0xff] %v1233_v21  ;;  %v1259_v18 = vmul.f32 %v1649_v56, %v1131_v4  ;;  %v1260_v34 = vmul.f32 %v1650_v45, %v1132_v32 }
 0x12d   : > { %1362 = vst [vmem:[%s2126_s13 + $0x2d8] sm:$0xff] %v1234_v0  ;;  %v1257_v17 = vmul.f32 %v1651_v27, %v1129_v6  ;;  %v1258_v0 = vmul.f32 %v1652_v13, %v1130_v11 }
 0x12e   : > { %1389 = vst [vmem:[%s2126_s13 + $0x3b0] sm:$0xff] %v1261_v24  ;;  %v1653_v24 = vld [vmem:[%s1737_s24 + $0x3d0] sm:$0xff] }
 0x12f   : > { %1390 = vst [vmem:[%s2126_s13 + $0x3b8] sm:$0xff] %v1262_v9  ;;  %v1654_v9 = vld [vmem:[%s1737_s24 + $0x3d8] sm:$0xff] }
 0x130   : > { %1369 = vst [vmem:[%s2126_s13 + $0x310] sm:$0xff] %v1241_v62  ;;  %v1656_v62 = vld [vmem:[%s1737_s24 + $0x3c8] sm:$0xff] }
 0x131   : > { %1370 = vst [vmem:[%s2126_s13 + $0x318] sm:$0xff] %v1242_v48  ;;  %v1003_v15 = vpop.permute.xlu1 %1002 }
 0x132   : > { %1367 = vst [vmem:[%s2126_s13 + $0x300] sm:$0xff] %v1239_v14  ;;  %v1137_v19 = vmul.f32 %v1003_v15, %v2107_v35  ;;  %v1138_v21 = vmul.f32 %v1003_v15, %v2111_v41  ;;  %v998_v40 = vpop.permute.xlu0 %997  ;;  %v1658_v14 = vld [vmem:[%s1737_s24 + $0x3f8] sm:$0xff] }
 0x133   : > { %1368 = vst [vmem:[%s2126_s13 + $0x308] sm:$0xff] %v1240_v47  ;;  %v1135_v23 = vmul.f32 %v998_v40, %v2107_v35  ;;  %v1136_v63 = vmul.f32 %v998_v40, %v2111_v41 }
 0x134   : > { %1395 = vst [vmem:[%s2126_s13 + $0x3e0] sm:$0xff] %v1267_v49  ;;  %v1265_v38 = vmul.f32 %v1653_v24, %v1137_v19  ;;  %v1266_v25 = vmul.f32 %v1654_v9, %v1138_v21 }
 0x135   : > { %1396 = vst [vmem:[%s2126_s13 + $0x3e8] sm:$0xff] %v1268_v44  ;;  %v1263_v31 = vmul.f32 %v1655_v5, %v1135_v23  ;;  %v1264_v7 = vmul.f32 %v1656_v62, %v1136_v63 }
 0x136   : > { %1375 = vst [vmem:[%s2126_s13 + $0x340] sm:$0xff] %v1247_v54 }
 0x137   : > { %1376 = vst [vmem:[%s2126_s13 + $0x348] sm:$0xff] %v1248_v58 }
 0x138   : > { %1373 = vst [vmem:[%s2126_s13 + $0x330] sm:$0xff] %v1245_v1 }
 0x139   : > { %1374 = vst [vmem:[%s2126_s13 + $0x338] sm:$0xff] %v1246_v55 }
 0x13a   : > { %1381 = vst [vmem:[%s2126_s13 + $0x370] sm:$0xff] %v1253_v51  ;;  %v1013_v26 = vpop.permute.xlu0 %1012 }
 0x13b   : > { %1382 = vst [vmem:[%s2126_s13 + $0x378] sm:$0xff] %v1254_v50  ;;  %v1141_v8 = vmul.f32 %v1013_v26, %v2107_v35  ;;  %v1142_v48 = vmul.f32 %v1013_v26, %v2111_v41 }
 0x13c   : > { %1379 = vst [vmem:[%s2126_s13 + $0x360] sm:$0xff] %v1251_v3 }
 0x13d   : > { %1380 = vst [vmem:[%s2126_s13 + $0x368] sm:$0xff] %v1252_v10  ;;  %v1269_v12 = vmul.f32 %v1657_v42, %v1141_v8  ;;  %v1270_v43 = vmul.f32 %v1658_v14, %v1142_v48 }
 0x13e   : > { %1387 = vst [vmem:[%s2126_s13 + $0x3a0] sm:$0xff] %v1259_v18 }
 0x13f   : > { %1388 = vst [vmem:[%s2126_s13 + $0x3a8] sm:$0xff] %v1260_v34 }
 0x140   : > { %1385 = vst [vmem:[%s2126_s13 + $0x390] sm:$0xff] %v1257_v17 }
 0x141   : > { %1386 = vst [vmem:[%s2126_s13 + $0x398] sm:$0xff] %v1258_v0 }
 0x142   : > { %1393 = vst [vmem:[%s2126_s13 + $0x3d0] sm:$0xff] %v1265_v38 }
 0x143   : > { %1394 = vst [vmem:[%s2126_s13 + $0x3d8] sm:$0xff] %v1266_v25 }
 0x144   : > { %1391 = vst [vmem:[%s2126_s13 + $0x3c0] sm:$0xff] %v1263_v31 }
 0x145   : > { %1392 = vst [vmem:[%s2126_s13 + $0x3c8] sm:$0xff] %v1264_v7 }
 0x146   : > { %1397 = vst [vmem:[%s2126_s13 + $0x3f0] sm:$0xff] %v1269_v12 }
 0x147   : > { %1398 = vst [vmem:[%s2126_s13 + $0x3f8] sm:$0xff] %v1270_v43 }
 0x148 PF: > { %s12_s11 = sadd.s32 1, %s1681_s11   ;;  %s2670_s9 = smov %s1677_s10 }
 0x149   : > { %p9_p5 = scmp.ge.s32.totalorder %s12_s11, 4   ;;  %s2671_s10 = smov %s2673_s12 }
 0x14b   :  { %11 = sbr.rel (!%p9_p5) target bundleno = 2 (0x2), region = 58 }

</bundles_post_ra>
